<compile_context>
chip_gen: v7x
topology: tpu7x:2x2x1
jax: 0.10.0
libtpu: 0.0.40
codegen_flags: <defaults>
</compile_context>

<pallas_src>
import functools

import jax
import jax.numpy as jnp
from jax.experimental import pallas as pl
from jax.experimental.pallas import tpu as pltpu

Z_SIZE = 8      # model.z_size (must be even)
HIDDEN = 100    # fixed by the module (nn.Linear(z_size, 100))
N_FLOWS = 2     # hyper_config['n_flows']
H_PAD = 128     # hidden padded to a full lane tile


def _make_flow_kernel(n_flows, z_size, tile_n):
    """Fused kernel: statically unrolled 2*n_flows masked coupling passes."""
    half = z_size // 2
    n_passes = 2 * n_flows

    def kernel(z_ref, w0_ref, b0_ref, w1_ref, b1_ref, w2_ref, b2_ref,
               z_out_ref, logdet_ref):
        z = z_ref[...]                                        # [Z, TN]
        logdet = jnp.zeros((1, tile_n), jnp.float32)

        row = jax.lax.broadcasted_iota(jnp.int32, (z_size, tile_n), 0)
        keep_lo = row < half                                  # pass 0 of each flow
        keep_hi = jnp.logical_not(keep_lo)                    # pass 1 of each flow

        for p in range(n_passes):                             # static unroll (4 passes)
            keep = keep_hi if (p % 2) else keep_lo

            # W0 is pre-masked per pass, so the matmul sees z1 = z * mask implicitly.
            h = jnp.tanh(
                jnp.dot(w0_ref[p], z, preferred_element_type=jnp.float32)
                + b0_ref[p])                                  # [H_pad, TN]
            mew = (jnp.dot(w1_ref[p], h, preferred_element_type=jnp.float32)
                   + b1_ref[p])                               # [Z, TN]
            a = (jnp.dot(w2_ref[p], h, preferred_element_type=jnp.float32)
                 + b2_ref[p] + 5.0)                           # pre-sigmoid logits
            sig = jax.nn.sigmoid(a)
            # Stable log(sigmoid(a)) = min(a, 0) - log1p(exp(-|a|))
            log_sig = jnp.minimum(a, 0.0) - jnp.log1p(jnp.exp(-jnp.abs(a)))

            # z_new = z*mask + (z*sig + mew)*(1-mask)
            z = jnp.where(keep, z, z * sig + mew)
            logdet = logdet + jnp.sum(
                jnp.where(keep, 0.0, log_sig), axis=0, keepdims=True)

        z_out_ref[...] = z
        logdet_ref[...] = logdet

    return kernel


def _pack_params(params, z_size, h_pad=H_PAD):
    """Transpose, zero-pad hidden to h_pad, pre-mask W0 per pass, stack per pass."""
    half = z_size // 2
    idx = jnp.arange(z_size)
    masks = [(idx < half).astype(jnp.float32),
             (idx >= half).astype(jnp.float32)]               # [Z] each

    w0m, b0s, w1s, b1s, w2s, b2s = [], [], [], [], [], []
    for p in params:
        H = p["w0"].shape[1]
        pad = h_pad - H
        w0T = jnp.pad(p["w0"].T.astype(jnp.float32), ((0, pad), (0, 0)))   # [H_pad, Z]
        b0T = jnp.pad(p["b0"].T.astype(jnp.float32), ((0, pad), (0, 0)))   # [H_pad, 1]
        w1T = jnp.pad(p["w1"].T.astype(jnp.float32), ((0, 0), (0, pad)))   # [Z, H_pad]
        b1T = p["b1"].T.astype(jnp.float32)                                # [Z, 1]
        w2T = jnp.pad(p["w2"].T.astype(jnp.float32), ((0, 0), (0, pad)))   # [Z, H_pad]
        b2T = p["b2"].T.astype(jnp.float32)                                # [Z, 1]
        for m in masks:
            w0m.append(w0T * m[None, :])   # fold mask into W0 columns
            b0s.append(b0T)
            w1s.append(w1T)
            b1s.append(b1T)
            w2s.append(w2T)
            b2s.append(b2T)
    return (jnp.stack(w0m), jnp.stack(b0s), jnp.stack(w1s),
            jnp.stack(b1s), jnp.stack(w2s), jnp.stack(b2s))


@functools.partial(jax.jit, static_argnames=("tile_n",))
def flow1_forward(z, params, *, tile_n=128):
    """z: [P, B, Z]; params: list of n_flows dicts with pre-transposed [in, out] weights.

    Returns (z_out [P, B, Z], logdetsum [P, B]) -- same semantics as flow1.forward.
    """
    P, B, Z = z.shape
    n_flows = len(params)
    n_passes = 2 * n_flows
    N = P * B
    assert tile_n % 128 == 0

    num_tiles = pl.cdiv(N, tile_n)
    n_pad = num_tiles * tile_n

    # Lane-dense working layout: [Z, N_pad]
    zT = jnp.transpose(z.reshape(N, Z).astype(jnp.float32))
    if n_pad != N:
        zT = jnp.pad(zT, ((0, 0), (0, n_pad - N)))

    w0m, b0, w1, b1, w2, b2 = _pack_params(params, Z)
    h_pad = w0m.shape[1]

    kernel = _make_flow_kernel(n_flows, Z, tile_n)

    z_out_T, logdet = pl.pallas_call(
        kernel,
        out_shape=(
            jax.ShapeDtypeStruct((Z, n_pad), jnp.float32),
            jax.ShapeDtypeStruct((1, n_pad), jnp.float32),
        ),
        grid_spec=pltpu.PrefetchScalarGridSpec(
            num_scalar_prefetch=0,
            grid=(num_tiles,),
            in_specs=[
                pl.BlockSpec((Z, tile_n), lambda i: (0, i)),            # zT tile
                pl.BlockSpec((n_passes, h_pad, Z), lambda i: (0, 0, 0)),  # masked W0
                pl.BlockSpec((n_passes, h_pad, 1), lambda i: (0, 0, 0)),  # b0
                pl.BlockSpec((n_passes, Z, h_pad), lambda i: (0, 0, 0)),  # W1
                pl.BlockSpec((n_passes, Z, 1), lambda i: (0, 0, 0)),      # b1
                pl.BlockSpec((n_passes, Z, h_pad), lambda i: (0, 0, 0)),  # W2
                pl.BlockSpec((n_passes, Z, 1), lambda i: (0, 0, 0)),      # b2
            ],
            out_specs=[
                pl.BlockSpec((Z, tile_n), lambda i: (0, i)),
                pl.BlockSpec((1, tile_n), lambda i: (0, i)),
            ],
        ),
        compiler_params=pltpu.CompilerParams(
            dimension_semantics=("parallel",),
            vmem_limit_bytes=32 * 1024 * 1024,
        ),
        input_output_aliases={0: 0},
    )(zT, w0m, b0, w1, b1, w2, b2)

    z_out = jnp.transpose(z_out_T[:, :N]).reshape(P, B, Z)
    logdetsum = logdet[0, :N].reshape(P, B)
    return z_out, logdetsum


def init_params(key, n_flows, z_size, hidden):
    """Deterministic init mirroring nn.Linear default (uniform +/- 1/sqrt(fan_in)).

    Weights stored transposed: [in, out] so reference computes x @ W + b."""
    params = []
    for _ in range(n_flows):
        key, k0, k1, k2, k3, k4, k5 = jax.random.split(key, 7)
        lim0 = 1.0 / (z_size ** 0.5)
        lim1 = 1.0 / (hidden ** 0.5)
        params.append({
            "w0": jax.random.uniform(k0, (z_size, hidden), jnp.float32, -lim0, lim0),
            "b0": jax.random.uniform(k1, (1, hidden), jnp.float32, -lim0, lim0),
            "w1": jax.random.uniform(k2, (hidden, z_size), jnp.float32, -lim1, lim1),
            "b1": jax.random.uniform(k3, (1, z_size), jnp.float32, -lim1, lim1),
            "w2": jax.random.uniform(k4, (hidden, z_size), jnp.float32, -lim1, lim1),
            "b2": jax.random.uniform(k5, (1, z_size), jnp.float32, -lim1, lim1),
        })
    return params


def _reference_forward(z, params):
    """Pure-JAX reference mirroring the PyTorch code, for correctness check."""
    P, B, Z = z.shape
    half = Z // 2
    idx = jnp.arange(Z)[None, :]
    masks = [(idx < half).astype(jnp.float32), (idx >= half).astype(jnp.float32)]
    z2d = z.reshape(P * B, Z)
    logdetsum = jnp.zeros((P * B,), jnp.float32)
    for p in params:
        for mask in masks:
            z1 = z2d * mask
            h = jnp.tanh(z1 @ p["w0"] + p["b0"])
            mew = h @ p["w1"] + p["b1"]
            sig = jax.nn.sigmoid(h @ p["w2"] + p["b2"] + 5.0)
            z2 = (z2d * sig + mew) * (1.0 - mask)
            z2d = z1 + z2
            logdetsum = logdetsum + jnp.sum((1.0 - mask) * jnp.log(sig), axis=1)
    return z2d.reshape(P, B, Z), logdetsum.reshape(P, B)


if __name__ == "__main__":
    key = jax.random.PRNGKey(0)
    kz, kp = jax.random.split(key)

    P, B = 4, 64                                  # z: [P, B, Z] -> N = 256 (grid of 2)
    z = jax.random.normal(kz, (P, B, Z_SIZE), jnp.float32)
    params = init_params(kp, N_FLOWS, Z_SIZE, HIDDEN)

    z_out, logdet = flow1_forward(z, params, tile_n=128)
    jax.block_until_ready((z_out, logdet))

    z_ref, ld_ref = _reference_forward(z, params)
    assert z_out.shape == (P, B, Z_SIZE) and logdet.shape == (P, B)
    assert jnp.allclose(z_out, z_ref, atol=1e-5, rtol=1e-5)
    assert jnp.allclose(logdet, ld_ref, atol=1e-5, rtol=1e-5)

    print("KERNEL_OK")
</pallas_src>

<mosaic_0001>
module attributes {stable_mosaic.version = 11 : i64} {
  func.func @kernel(%arg0: i32, %arg1: memref<8x128xf32, #tpu.memory_space<vmem>>, %arg2: memref<4x128x8xf32, #tpu.memory_space<vmem>>, %arg3: memref<4x128x1xf32, #tpu.memory_space<vmem>>, %arg4: memref<4x8x128xf32, #tpu.memory_space<vmem>>, %arg5: memref<4x8x1xf32, #tpu.memory_space<vmem>>, %arg6: memref<4x8x128xf32, #tpu.memory_space<vmem>>, %arg7: memref<4x8x1xf32, #tpu.memory_space<vmem>>, %arg8: memref<8x128xf32, #tpu.memory_space<vmem>>, %arg9: memref<1x128xf32, #tpu.memory_space<vmem>>) attributes {dimension_semantics = [#tpu.dimension_semantics<parallel>], iteration_bounds = array<i64: 2>, scalar_prefetch = 0 : i64, scratch_operands = 0 : i64, tpu.core_type = #tpu.core_type<tc>, window_params = [{transform_indices = @transform_0, window_bounds = array<i64: 8, 128>}, {pipeline_mode = #tpu.pipeline_mode<synchronous>, transform_indices = @transform_1, window_bounds = array<i64: 4, 128, 8>}, {pipeline_mode = #tpu.pipeline_mode<synchronous>, transform_indices = @transform_2, window_bounds = array<i64: 4, 128, 1>}, {pipeline_mode = #tpu.pipeline_mode<synchronous>, transform_indices = @transform_3, window_bounds = array<i64: 4, 8, 128>}, {pipeline_mode = #tpu.pipeline_mode<synchronous>, transform_indices = @transform_4, window_bounds = array<i64: 4, 8, 1>}, {pipeline_mode = #tpu.pipeline_mode<synchronous>, transform_indices = @transform_5, window_bounds = array<i64: 4, 8, 128>}, {pipeline_mode = #tpu.pipeline_mode<synchronous>, transform_indices = @transform_6, window_bounds = array<i64: 4, 8, 1>}, {transform_indices = @transform_7, window_bounds = array<i64: 8, 128>}, {transform_indices = @transform_8, window_bounds = array<i64: 1, 128>}]} {
    %c0 = arith.constant 0 : index
    %c0_0 = arith.constant 0 : index
    %0 = vector.load %arg1[%c0, %c0_0] : memref<8x128xf32, #tpu.memory_space<vmem>>, vector<8x128xf32>
    %cst = arith.constant 0.000000e+00 : f32
    %1 = vector.broadcast %cst : f32 to vector<1x128xf32>
    %2 = tpu.iota {dimensions = array<i32: 0>} : vector<8x128xi32>
    %c4_i32 = arith.constant 4 : i32
    %3 = vector.broadcast %c4_i32 : i32 to vector<8x128xi32>
    %4 = arith.cmpi slt, %2, %3 : vector<8x128xi32>
    %cst_1 = arith.constant dense<true> : vector<8x128xi1>
    %5 = arith.xori %4, %cst_1 : vector<8x128xi1>
    %c0_2 = arith.constant 0 : index
    %c0_3 = arith.constant 0 : index
    %c0_4 = arith.constant 0 : index
    %6 = vector.load %arg2[%c0_2, %c0_3, %c0_4] : memref<4x128x8xf32, #tpu.memory_space<vmem>>, vector<1x128x8xf32>
    %7 = vector.shape_cast %6 : vector<1x128x8xf32> to vector<128x8xf32>
    %cst_5 = arith.constant dense<0.000000e+00> : vector<128x128xf32>
    %8 = tpu.matmul %7, %0, %cst_5 {dimension_numbers = #tpu.dot_dimension_numbers<[1], [0], [0], [1], [0, 0, 1, 1], [], []>} : vector<128x8xf32>, vector<8x128xf32>, vector<128x128xf32> -> vector<128x128xf32>
    %c0_6 = arith.constant 0 : index
    %c0_7 = arith.constant 0 : index
    %c0_8 = arith.constant 0 : index
    %9 = vector.load %arg3[%c0_6, %c0_7, %c0_8] : memref<4x128x1xf32, #tpu.memory_space<vmem>>, vector<1x128x1xf32>
    %10 = vector.shape_cast %9 : vector<1x128x1xf32> to vector<128x1xf32>
    %11 = vector.broadcast %10 : vector<128x1xf32> to vector<128x128xf32>
    %12 = arith.addf %8, %11 : vector<128x128xf32>
    %13 = math.tanh %12 : vector<128x128xf32>
    %c0_9 = arith.constant 0 : index
    %c0_10 = arith.constant 0 : index
    %c0_11 = arith.constant 0 : index
    %14 = vector.load %arg4[%c0_9, %c0_10, %c0_11] : memref<4x8x128xf32, #tpu.memory_space<vmem>>, vector<1x8x128xf32>
    %15 = vector.shape_cast %14 : vector<1x8x128xf32> to vector<8x128xf32>
    %cst_12 = arith.constant dense<0.000000e+00> : vector<8x128xf32>
    %16 = tpu.matmul %15, %13, %cst_12 {dimension_numbers = #tpu.dot_dimension_numbers<[1], [0], [0], [1], [0, 0, 1, 1], [], []>} : vector<8x128xf32>, vector<128x128xf32>, vector<8x128xf32> -> vector<8x128xf32>
    %c0_13 = arith.constant 0 : index
    %c0_14 = arith.constant 0 : index
    %c0_15 = arith.constant 0 : index
    %17 = vector.load %arg5[%c0_13, %c0_14, %c0_15] : memref<4x8x1xf32, #tpu.memory_space<vmem>>, vector<1x8x1xf32>
    %18 = vector.shape_cast %17 : vector<1x8x1xf32> to vector<8x1xf32>
    %19 = vector.broadcast %18 : vector<8x1xf32> to vector<8x128xf32>
    %20 = arith.addf %16, %19 : vector<8x128xf32>
    %c0_16 = arith.constant 0 : index
    %c0_17 = arith.constant 0 : index
    %c0_18 = arith.constant 0 : index
    %21 = vector.load %arg6[%c0_16, %c0_17, %c0_18] : memref<4x8x128xf32, #tpu.memory_space<vmem>>, vector<1x8x128xf32>
    %22 = vector.shape_cast %21 : vector<1x8x128xf32> to vector<8x128xf32>
    %cst_19 = arith.constant dense<0.000000e+00> : vector<8x128xf32>
    %23 = tpu.matmul %22, %13, %cst_19 {dimension_numbers = #tpu.dot_dimension_numbers<[1], [0], [0], [1], [0, 0, 1, 1], [], []>} : vector<8x128xf32>, vector<128x128xf32>, vector<8x128xf32> -> vector<8x128xf32>
    %c0_20 = arith.constant 0 : index
    %c0_21 = arith.constant 0 : index
    %c0_22 = arith.constant 0 : index
    %24 = vector.load %arg7[%c0_20, %c0_21, %c0_22] : memref<4x8x1xf32, #tpu.memory_space<vmem>>, vector<1x8x1xf32>
    %25 = vector.shape_cast %24 : vector<1x8x1xf32> to vector<8x1xf32>
    %26 = vector.broadcast %25 : vector<8x1xf32> to vector<8x128xf32>
    %27 = arith.addf %23, %26 : vector<8x128xf32>
    %cst_23 = arith.constant 5.000000e+00 : f32
    %28 = vector.broadcast %cst_23 : f32 to vector<8x128xf32>
    %29 = arith.addf %27, %28 : vector<8x128xf32>
    %30 = arith.negf %29 : vector<8x128xf32>
    %31 = math.exp %30 : vector<8x128xf32>
    %cst_24 = arith.constant 1.000000e+00 : f32
    %32 = vector.broadcast %cst_24 : f32 to vector<8x128xf32>
    %33 = arith.addf %32, %31 : vector<8x128xf32>
    %34 = arith.divf %32, %33 : vector<8x128xf32>
    %cst_25 = arith.constant 0.000000e+00 : f32
    %35 = vector.broadcast %cst_25 : f32 to vector<8x128xf32>
    %36 = arith.minimumf %29, %35 : vector<8x128xf32>
    %37 = math.absf %29 : vector<8x128xf32>
    %cst_26 = arith.constant 0.000000e+00 : f32
    %38 = vector.broadcast %cst_26 : f32 to vector<8x128xf32>
    %39 = arith.subf %38, %37 : vector<8x128xf32>
    %40 = math.exp %39 : vector<8x128xf32>
    %41 = math.log1p %40 : vector<8x128xf32>
    %42 = arith.subf %36, %41 : vector<8x128xf32>
    %43 = arith.mulf %0, %34 : vector<8x128xf32>
    %44 = arith.addf %43, %20 : vector<8x128xf32>
    %45 = arith.select %4, %0, %44 : vector<8x128xi1>, vector<8x128xf32>
    %cst_27 = arith.constant 0.000000e+00 : f32
    %46 = vector.broadcast %cst_27 : f32 to vector<8x128xf32>
    %47 = arith.select %4, %46, %42 : vector<8x128xi1>, vector<8x128xf32>
    %cst_28 = arith.constant dense<0.000000e+00> : vector<128xf32>
    %48 = vector.multi_reduction <add>, %47, %cst_28 [0] : vector<8x128xf32> to vector<128xf32>
    %49 = vector.shape_cast %48 : vector<128xf32> to vector<1x128xf32>
    %50 = arith.addf %1, %49 : vector<1x128xf32>
    %c1 = arith.constant 1 : index
    %c0_29 = arith.constant 0 : index
    %c0_30 = arith.constant 0 : index
    %51 = vector.load %arg2[%c1, %c0_29, %c0_30] : memref<4x128x8xf32, #tpu.memory_space<vmem>>, vector<1x128x8xf32>
    %52 = vector.shape_cast %51 : vector<1x128x8xf32> to vector<128x8xf32>
    %cst_31 = arith.constant dense<0.000000e+00> : vector<128x128xf32>
    %53 = tpu.matmul %52, %45, %cst_31 {dimension_numbers = #tpu.dot_dimension_numbers<[1], [0], [0], [1], [0, 0, 1, 1], [], []>} : vector<128x8xf32>, vector<8x128xf32>, vector<128x128xf32> -> vector<128x128xf32>
    %c1_32 = arith.constant 1 : index
    %c0_33 = arith.constant 0 : index
    %c0_34 = arith.constant 0 : index
    %54 = vector.load %arg3[%c1_32, %c0_33, %c0_34] : memref<4x128x1xf32, #tpu.memory_space<vmem>>, vector<1x128x1xf32>
    %55 = vector.shape_cast %54 : vector<1x128x1xf32> to vector<128x1xf32>
    %56 = vector.broadcast %55 : vector<128x1xf32> to vector<128x128xf32>
    %57 = arith.addf %53, %56 : vector<128x128xf32>
    %58 = math.tanh %57 : vector<128x128xf32>
    %c1_35 = arith.constant 1 : index
    %c0_36 = arith.constant 0 : index
    %c0_37 = arith.constant 0 : index
    %59 = vector.load %arg4[%c1_35, %c0_36, %c0_37] : memref<4x8x128xf32, #tpu.memory_space<vmem>>, vector<1x8x128xf32>
    %60 = vector.shape_cast %59 : vector<1x8x128xf32> to vector<8x128xf32>
    %cst_38 = arith.constant dense<0.000000e+00> : vector<8x128xf32>
    %61 = tpu.matmul %60, %58, %cst_38 {dimension_numbers = #tpu.dot_dimension_numbers<[1], [0], [0], [1], [0, 0, 1, 1], [], []>} : vector<8x128xf32>, vector<128x128xf32>, vector<8x128xf32> -> vector<8x128xf32>
    %c1_39 = arith.constant 1 : index
    %c0_40 = arith.constant 0 : index
    %c0_41 = arith.constant 0 : index
    %62 = vector.load %arg5[%c1_39, %c0_40, %c0_41] : memref<4x8x1xf32, #tpu.memory_space<vmem>>, vector<1x8x1xf32>
    %63 = vector.shape_cast %62 : vector<1x8x1xf32> to vector<8x1xf32>
    %64 = vector.broadcast %63 : vector<8x1xf32> to vector<8x128xf32>
    %65 = arith.addf %61, %64 : vector<8x128xf32>
    %c1_42 = arith.constant 1 : index
    %c0_43 = arith.constant 0 : index
    %c0_44 = arith.constant 0 : index
    %66 = vector.load %arg6[%c1_42, %c0_43, %c0_44] : memref<4x8x128xf32, #tpu.memory_space<vmem>>, vector<1x8x128xf32>
    %67 = vector.shape_cast %66 : vector<1x8x128xf32> to vector<8x128xf32>
    %cst_45 = arith.constant dense<0.000000e+00> : vector<8x128xf32>
    %68 = tpu.matmul %67, %58, %cst_45 {dimension_numbers = #tpu.dot_dimension_numbers<[1], [0], [0], [1], [0, 0, 1, 1], [], []>} : vector<8x128xf32>, vector<128x128xf32>, vector<8x128xf32> -> vector<8x128xf32>
    %c1_46 = arith.constant 1 : index
    %c0_47 = arith.constant 0 : index
    %c0_48 = arith.constant 0 : index
    %69 = vector.load %arg7[%c1_46, %c0_47, %c0_48] : memref<4x8x1xf32, #tpu.memory_space<vmem>>, vector<1x8x1xf32>
    %70 = vector.shape_cast %69 : vector<1x8x1xf32> to vector<8x1xf32>
    %71 = vector.broadcast %70 : vector<8x1xf32> to vector<8x128xf32>
    %72 = arith.addf %68, %71 : vector<8x128xf32>
    %cst_49 = arith.constant 5.000000e+00 : f32
    %73 = vector.broadcast %cst_49 : f32 to vector<8x128xf32>
    %74 = arith.addf %72, %73 : vector<8x128xf32>
    %75 = arith.negf %74 : vector<8x128xf32>
    %76 = math.exp %75 : vector<8x128xf32>
    %cst_50 = arith.constant 1.000000e+00 : f32
    %77 = vector.broadcast %cst_50 : f32 to vector<8x128xf32>
    %78 = arith.addf %77, %76 : vector<8x128xf32>
    %79 = arith.divf %77, %78 : vector<8x128xf32>
    %cst_51 = arith.constant 0.000000e+00 : f32
    %80 = vector.broadcast %cst_51 : f32 to vector<8x128xf32>
    %81 = arith.minimumf %74, %80 : vector<8x128xf32>
    %82 = math.absf %74 : vector<8x128xf32>
    %cst_52 = arith.constant 0.000000e+00 : f32
    %83 = vector.broadcast %cst_52 : f32 to vector<8x128xf32>
    %84 = arith.subf %83, %82 : vector<8x128xf32>
    %85 = math.exp %84 : vector<8x128xf32>
    %86 = math.log1p %85 : vector<8x128xf32>
    %87 = arith.subf %81, %86 : vector<8x128xf32>
    %88 = arith.mulf %45, %79 : vector<8x128xf32>
    %89 = arith.addf %88, %65 : vector<8x128xf32>
    %90 = arith.select %5, %45, %89 : vector<8x128xi1>, vector<8x128xf32>
    %cst_53 = arith.constant 0.000000e+00 : f32
    %91 = vector.broadcast %cst_53 : f32 to vector<8x128xf32>
    %92 = arith.select %5, %91, %87 : vector<8x128xi1>, vector<8x128xf32>
    %cst_54 = arith.constant dense<0.000000e+00> : vector<128xf32>
    %93 = vector.multi_reduction <add>, %92, %cst_54 [0] : vector<8x128xf32> to vector<128xf32>
    %94 = vector.shape_cast %93 : vector<128xf32> to vector<1x128xf32>
    %95 = arith.addf %50, %94 : vector<1x128xf32>
    %c2 = arith.constant 2 : index
    %c0_55 = arith.constant 0 : index
    %c0_56 = arith.constant 0 : index
    %96 = vector.load %arg2[%c2, %c0_55, %c0_56] : memref<4x128x8xf32, #tpu.memory_space<vmem>>, vector<1x128x8xf32>
    %97 = vector.shape_cast %96 : vector<1x128x8xf32> to vector<128x8xf32>
    %cst_57 = arith.constant dense<0.000000e+00> : vector<128x128xf32>
    %98 = tpu.matmul %97, %90, %cst_57 {dimension_numbers = #tpu.dot_dimension_numbers<[1], [0], [0], [1], [0, 0, 1, 1], [], []>} : vector<128x8xf32>, vector<8x128xf32>, vector<128x128xf32> -> vector<128x128xf32>
    %c2_58 = arith.constant 2 : index
    %c0_59 = arith.constant 0 : index
    %c0_60 = arith.constant 0 : index
    %99 = vector.load %arg3[%c2_58, %c0_59, %c0_60] : memref<4x128x1xf32, #tpu.memory_space<vmem>>, vector<1x128x1xf32>
    %100 = vector.shape_cast %99 : vector<1x128x1xf32> to vector<128x1xf32>
    %101 = vector.broadcast %100 : vector<128x1xf32> to vector<128x128xf32>
    %102 = arith.addf %98, %101 : vector<128x128xf32>
    %103 = math.tanh %102 : vector<128x128xf32>
    %c2_61 = arith.constant 2 : index
    %c0_62 = arith.constant 0 : index
    %c0_63 = arith.constant 0 : index
    %104 = vector.load %arg4[%c2_61, %c0_62, %c0_63] : memref<4x8x128xf32, #tpu.memory_space<vmem>>, vector<1x8x128xf32>
    %105 = vector.shape_cast %104 : vector<1x8x128xf32> to vector<8x128xf32>
    %cst_64 = arith.constant dense<0.000000e+00> : vector<8x128xf32>
    %106 = tpu.matmul %105, %103, %cst_64 {dimension_numbers = #tpu.dot_dimension_numbers<[1], [0], [0], [1], [0, 0, 1, 1], [], []>} : vector<8x128xf32>, vector<128x128xf32>, vector<8x128xf32> -> vector<8x128xf32>
    %c2_65 = arith.constant 2 : index
    %c0_66 = arith.constant 0 : index
    %c0_67 = arith.constant 0 : index
    %107 = vector.load %arg5[%c2_65, %c0_66, %c0_67] : memref<4x8x1xf32, #tpu.memory_space<vmem>>, vector<1x8x1xf32>
    %108 = vector.shape_cast %107 : vector<1x8x1xf32> to vector<8x1xf32>
    %109 = vector.broadcast %108 : vector<8x1xf32> to vector<8x128xf32>
    %110 = arith.addf %106, %109 : vector<8x128xf32>
    %c2_68 = arith.constant 2 : index
    %c0_69 = arith.constant 0 : index
    %c0_70 = arith.constant 0 : index
    %111 = vector.load %arg6[%c2_68, %c0_69, %c0_70] : memref<4x8x128xf32, #tpu.memory_space<vmem>>, vector<1x8x128xf32>
    %112 = vector.shape_cast %111 : vector<1x8x128xf32> to vector<8x128xf32>
    %cst_71 = arith.constant dense<0.000000e+00> : vector<8x128xf32>
    %113 = tpu.matmul %112, %103, %cst_71 {dimension_numbers = #tpu.dot_dimension_numbers<[1], [0], [0], [1], [0, 0, 1, 1], [], []>} : vector<8x128xf32>, vector<128x128xf32>, vector<8x128xf32> -> vector<8x128xf32>
    %c2_72 = arith.constant 2 : index
    %c0_73 = arith.constant 0 : index
    %c0_74 = arith.constant 0 : index
    %114 = vector.load %arg7[%c2_72, %c0_73, %c0_74] : memref<4x8x1xf32, #tpu.memory_space<vmem>>, vector<1x8x1xf32>
    %115 = vector.shape_cast %114 : vector<1x8x1xf32> to vector<8x1xf32>
    %116 = vector.broadcast %115 : vector<8x1xf32> to vector<8x128xf32>
    %117 = arith.addf %113, %116 : vector<8x128xf32>
    %cst_75 = arith.constant 5.000000e+00 : f32
    %118 = vector.broadcast %cst_75 : f32 to vector<8x128xf32>
    %119 = arith.addf %117, %118 : vector<8x128xf32>
    %120 = arith.negf %119 : vector<8x128xf32>
    %121 = math.exp %120 : vector<8x128xf32>
    %cst_76 = arith.constant 1.000000e+00 : f32
    %122 = vector.broadcast %cst_76 : f32 to vector<8x128xf32>
    %123 = arith.addf %122, %121 : vector<8x128xf32>
    %124 = arith.divf %122, %123 : vector<8x128xf32>
    %cst_77 = arith.constant 0.000000e+00 : f32
    %125 = vector.broadcast %cst_77 : f32 to vector<8x128xf32>
    %126 = arith.minimumf %119, %125 : vector<8x128xf32>
    %127 = math.absf %119 : vector<8x128xf32>
    %cst_78 = arith.constant 0.000000e+00 : f32
    %128 = vector.broadcast %cst_78 : f32 to vector<8x128xf32>
    %129 = arith.subf %128, %127 : vector<8x128xf32>
    %130 = math.exp %129 : vector<8x128xf32>
    %131 = math.log1p %130 : vector<8x128xf32>
    %132 = arith.subf %126, %131 : vector<8x128xf32>
    %133 = arith.mulf %90, %124 : vector<8x128xf32>
    %134 = arith.addf %133, %110 : vector<8x128xf32>
    %135 = arith.select %4, %90, %134 : vector<8x128xi1>, vector<8x128xf32>
    %cst_79 = arith.constant 0.000000e+00 : f32
    %136 = vector.broadcast %cst_79 : f32 to vector<8x128xf32>
    %137 = arith.select %4, %136, %132 : vector<8x128xi1>, vector<8x128xf32>
    %cst_80 = arith.constant dense<0.000000e+00> : vector<128xf32>
    %138 = vector.multi_reduction <add>, %137, %cst_80 [0] : vector<8x128xf32> to vector<128xf32>
    %139 = vector.shape_cast %138 : vector<128xf32> to vector<1x128xf32>
    %140 = arith.addf %95, %139 : vector<1x128xf32>
    %c3 = arith.constant 3 : index
    %c0_81 = arith.constant 0 : index
    %c0_82 = arith.constant 0 : index
    %141 = vector.load %arg2[%c3, %c0_81, %c0_82] : memref<4x128x8xf32, #tpu.memory_space<vmem>>, vector<1x128x8xf32>
    %142 = vector.shape_cast %141 : vector<1x128x8xf32> to vector<128x8xf32>
    %cst_83 = arith.constant dense<0.000000e+00> : vector<128x128xf32>
    %143 = tpu.matmul %142, %135, %cst_83 {dimension_numbers = #tpu.dot_dimension_numbers<[1], [0], [0], [1], [0, 0, 1, 1], [], []>} : vector<128x8xf32>, vector<8x128xf32>, vector<128x128xf32> -> vector<128x128xf32>
    %c3_84 = arith.constant 3 : index
    %c0_85 = arith.constant 0 : index
    %c0_86 = arith.constant 0 : index
    %144 = vector.load %arg3[%c3_84, %c0_85, %c0_86] : memref<4x128x1xf32, #tpu.memory_space<vmem>>, vector<1x128x1xf32>
    %145 = vector.shape_cast %144 : vector<1x128x1xf32> to vector<128x1xf32>
    %146 = vector.broadcast %145 : vector<128x1xf32> to vector<128x128xf32>
    %147 = arith.addf %143, %146 : vector<128x128xf32>
    %148 = math.tanh %147 : vector<128x128xf32>
    %c3_87 = arith.constant 3 : index
    %c0_88 = arith.constant 0 : index
    %c0_89 = arith.constant 0 : index
    %149 = vector.load %arg4[%c3_87, %c0_88, %c0_89] : memref<4x8x128xf32, #tpu.memory_space<vmem>>, vector<1x8x128xf32>
    %150 = vector.shape_cast %149 : vector<1x8x128xf32> to vector<8x128xf32>
    %cst_90 = arith.constant dense<0.000000e+00> : vector<8x128xf32>
    %151 = tpu.matmul %150, %148, %cst_90 {dimension_numbers = #tpu.dot_dimension_numbers<[1], [0], [0], [1], [0, 0, 1, 1], [], []>} : vector<8x128xf32>, vector<128x128xf32>, vector<8x128xf32> -> vector<8x128xf32>
    %c3_91 = arith.constant 3 : index
    %c0_92 = arith.constant 0 : index
    %c0_93 = arith.constant 0 : index
    %152 = vector.load %arg5[%c3_91, %c0_92, %c0_93] : memref<4x8x1xf32, #tpu.memory_space<vmem>>, vector<1x8x1xf32>
    %153 = vector.shape_cast %152 : vector<1x8x1xf32> to vector<8x1xf32>
    %154 = vector.broadcast %153 : vector<8x1xf32> to vector<8x128xf32>
    %155 = arith.addf %151, %154 : vector<8x128xf32>
    %c3_94 = arith.constant 3 : index
    %c0_95 = arith.constant 0 : index
    %c0_96 = arith.constant 0 : index
    %156 = vector.load %arg6[%c3_94, %c0_95, %c0_96] : memref<4x8x128xf32, #tpu.memory_space<vmem>>, vector<1x8x128xf32>
    %157 = vector.shape_cast %156 : vector<1x8x128xf32> to vector<8x128xf32>
    %cst_97 = arith.constant dense<0.000000e+00> : vector<8x128xf32>
    %158 = tpu.matmul %157, %148, %cst_97 {dimension_numbers = #tpu.dot_dimension_numbers<[1], [0], [0], [1], [0, 0, 1, 1], [], []>} : vector<8x128xf32>, vector<128x128xf32>, vector<8x128xf32> -> vector<8x128xf32>
    %c3_98 = arith.constant 3 : index
    %c0_99 = arith.constant 0 : index
    %c0_100 = arith.constant 0 : index
    %159 = vector.load %arg7[%c3_98, %c0_99, %c0_100] : memref<4x8x1xf32, #tpu.memory_space<vmem>>, vector<1x8x1xf32>
    %160 = vector.shape_cast %159 : vector<1x8x1xf32> to vector<8x1xf32>
    %161 = vector.broadcast %160 : vector<8x1xf32> to vector<8x128xf32>
    %162 = arith.addf %158, %161 : vector<8x128xf32>
    %cst_101 = arith.constant 5.000000e+00 : f32
    %163 = vector.broadcast %cst_101 : f32 to vector<8x128xf32>
    %164 = arith.addf %162, %163 : vector<8x128xf32>
    %165 = arith.negf %164 : vector<8x128xf32>
    %166 = math.exp %165 : vector<8x128xf32>
    %cst_102 = arith.constant 1.000000e+00 : f32
    %167 = vector.broadcast %cst_102 : f32 to vector<8x128xf32>
    %168 = arith.addf %167, %166 : vector<8x128xf32>
    %169 = arith.divf %167, %168 : vector<8x128xf32>
    %cst_103 = arith.constant 0.000000e+00 : f32
    %170 = vector.broadcast %cst_103 : f32 to vector<8x128xf32>
    %171 = arith.minimumf %164, %170 : vector<8x128xf32>
    %172 = math.absf %164 : vector<8x128xf32>
    %cst_104 = arith.constant 0.000000e+00 : f32
    %173 = vector.broadcast %cst_104 : f32 to vector<8x128xf32>
    %174 = arith.subf %173, %172 : vector<8x128xf32>
    %175 = math.exp %174 : vector<8x128xf32>
    %176 = math.log1p %175 : vector<8x128xf32>
    %177 = arith.subf %171, %176 : vector<8x128xf32>
    %178 = arith.mulf %135, %169 : vector<8x128xf32>
    %179 = arith.addf %178, %155 : vector<8x128xf32>
    %180 = arith.select %5, %135, %179 : vector<8x128xi1>, vector<8x128xf32>
    %cst_105 = arith.constant 0.000000e+00 : f32
    %181 = vector.broadcast %cst_105 : f32 to vector<8x128xf32>
    %182 = arith.select %5, %181, %177 : vector<8x128xi1>, vector<8x128xf32>
    %cst_106 = arith.constant dense<0.000000e+00> : vector<128xf32>
    %183 = vector.multi_reduction <add>, %182, %cst_106 [0] : vector<8x128xf32> to vector<128xf32>
    %184 = vector.shape_cast %183 : vector<128xf32> to vector<1x128xf32>
    %185 = arith.addf %140, %184 : vector<1x128xf32>
    %c0_107 = arith.constant 0 : index
    %c0_108 = arith.constant 0 : index
    %186 = vector.load %arg8[%c0_107, %c0_108] : memref<8x128xf32, #tpu.memory_space<vmem>>, vector<8x128xf32>
    tpu.vector_store %arg8[%c0_107, %c0_108], %180 {strides = array<i32>} : memref<8x128xf32, #tpu.memory_space<vmem>>, vector<8x128xf32>,
    %c0_109 = arith.constant 0 : index
    %c0_110 = arith.constant 0 : index
    %187 = vector.load %arg9[%c0_109, %c0_110] : memref<1x128xf32, #tpu.memory_space<vmem>>, vector<1x128xf32>
    tpu.vector_store %arg9[%c0_109, %c0_110], %185 {strides = array<i32>} : memref<1x128xf32, #tpu.memory_space<vmem>>, vector<1x128xf32>,
    return
  }
  func.func @transform_0(%arg0: i32) -> (i32, i32) {
    %c0_i32 = arith.constant 0 : i32
    %c0_i32_0 = arith.constant 0 : i32
    return %c0_i32, %arg0 : i32, i32
  }
  func.func @transform_1(%arg0: i32) -> (i32, i32, i32) {
    %c0_i32 = arith.constant 0 : i32
    %c0_i32_0 = arith.constant 0 : i32
    %c0_i32_1 = arith.constant 0 : i32
    %c0_i32_2 = arith.constant 0 : i32
    return %c0_i32, %c0_i32_0, %c0_i32_1 : i32, i32, i32
  }
  func.func @transform_2(%arg0: i32) -> (i32, i32, i32) {
    %c0_i32 = arith.constant 0 : i32
    %c0_i32_0 = arith.constant 0 : i32
    %c0_i32_1 = arith.constant 0 : i32
    %c0_i32_2 = arith.constant 0 : i32
    return %c0_i32, %c0_i32_0, %c0_i32_1 : i32, i32, i32
  }
  func.func @transform_3(%arg0: i32) -> (i32, i32, i32) {
    %c0_i32 = arith.constant 0 : i32
    %c0_i32_0 = arith.constant 0 : i32
    %c0_i32_1 = arith.constant 0 : i32
    %c0_i32_2 = arith.constant 0 : i32
    return %c0_i32, %c0_i32_0, %c0_i32_1 : i32, i32, i32
  }
  func.func @transform_4(%arg0: i32) -> (i32, i32, i32) {
    %c0_i32 = arith.constant 0 : i32
    %c0_i32_0 = arith.constant 0 : i32
    %c0_i32_1 = arith.constant 0 : i32
    %c0_i32_2 = arith.constant 0 : i32
    return %c0_i32, %c0_i32_0, %c0_i32_1 : i32, i32, i32
  }
  func.func @transform_5(%arg0: i32) -> (i32, i32, i32) {
    %c0_i32 = arith.constant 0 : i32
    %c0_i32_0 = arith.constant 0 : i32
    %c0_i32_1 = arith.constant 0 : i32
    %c0_i32_2 = arith.constant 0 : i32
    return %c0_i32, %c0_i32_0, %c0_i32_1 : i32, i32, i32
  }
  func.func @transform_6(%arg0: i32) -> (i32, i32, i32) {
    %c0_i32 = arith.constant 0 : i32
    %c0_i32_0 = arith.constant 0 : i32
    %c0_i32_1 = arith.constant 0 : i32
    %c0_i32_2 = arith.constant 0 : i32
    return %c0_i32, %c0_i32_0, %c0_i32_1 : i32, i32, i32
  }
  func.func @transform_7(%arg0: i32) -> (i32, i32) {
    %c0_i32 = arith.constant 0 : i32
    %c0_i32_0 = arith.constant 0 : i32
    return %c0_i32, %arg0 : i32, i32
  }
  func.func @transform_8(%arg0: i32) -> (i32, i32) {
    %c0_i32 = arith.constant 0 : i32
    %c0_i32_0 = arith.constant 0 : i32
    return %c0_i32, %arg0 : i32, i32
  }
}

</mosaic_0001>

<bundles_post_ra>
// kernel: squeeze.1
= control target key start
LH: loop header
LB: loop body
LE: loop exit
PB: predicated region body
PF: predicated region fallthrough
CT: control target
= control target key end

     0   :  { %s85_s0 = inlined_call_operand.vmem [shape: f32[256], index: 0, kind: input, shape index: {}]   ;;  %s86_s1 = inlined_call_operand.hbm [shape: f32[4,64], index: 1, kind: output, shape index: {}]  }
   0x1   :  { %v5_v0 = vld [vmem:[%s85_s0] sm:$0x3] }
   0x2   :  { %2 = vsyncpa [#allocation1], 0  ;;  %6 = vst [vmem:[#allocation3] sm:$0x3] %v5_v0  ;;  %vm8_vm0 = vcmask 523264   ;;  %s58_s0 = smov 64  }
   0x3   :  { %s59_s8 = smov [#allocation0]  }
   0x4   :  { %s26_s9 = sshll.u32 %s59_s8, 4  ;;  %s27_s9 = int_to_ptr.vmem [resolvable:$true] %s26_s9 }
   0x5   :  { %s34_s10 = scalar_lea.vmem %s27_s9, 64  ;;  %p39_p1 = scmp.lt.s32.totalorder %s27_s9, %s27_s9 }
   0x6   :  { %p35_p0 = scmp.ne.s32.totalorder %s27_s9, %s34_s10  ;;  %p40_p2 = scmp.lt.s32.totalorder %s34_s10, %s34_s10 }
   0x8   :  { %p41_p3 = por %p40_p2, %p39_p1 }
   0x9   :  { %v10_v1 = vld [vmem:[#allocation3] sm:$0x3]  }
   0xa   :  { %v7_v2 = vld [vmem:[#allocation3] sm:$0x3]   ;;  %11 = vrot.lane.b32.xlu0 %v10_v1, %s58_s0  ;;  %p42_p4 = pnand %p41_p3, %p35_p0 }
   0xb   :  { %9 = vst.msk [vmem:[#allocation2] ss:$2 sm:$0x3] %vm8_vm0, %v7_v2  }
  0x7c   :  { %v12_v3 = vpop.permute.xlu0 %11  }
  0x7d   :  { %15 = vst.msk [vmem:[#allocation2 + $0x1] ss:$2 sm:$0x3] %vm8_vm0, %v12_v3  }
  0x84   :  { %v19_v4 = vld [vmem:[#allocation2] sm:$0xf] }
  0x85   :  { %21 = vst [vmem:[#allocation0] sm:$0xf] %v19_v4 }
  0x86   :  { %45 = shalt.err (!%p42_p4)
}
  0x87   :  { %s46_s13 = scalar_lea.hbm %s86_s1, 64 }
  0x88   :  { %p47_p5 = scmp.ne.s32.totalorder %s86_s1, %s46_s13  ;;  %p50_p6 = scmp.lt.u32.totalorder %s46_s13, %s86_s1 }
  0x8a   :  { %p52_p7 = pnand %p50_p6, %p47_p5 }
  0x8c   :  { %55 = shalt.err (!%p52_p7)
}
  0x8d   :  { %29 = dma.vmem_to_hbm [thread:$0]  %s27_s9, 64, %s86_s1, [#allocation1]  }
  0x8e   :  { %56 = dma.done.wait [#allocation1], 64  }
  0x8f   :  { %57 = vsyncadd [#allocation1], 4294967232 }
  0x90   :  { %31 = vsyncpa [#allocation1], 1 }

// kernel: flow1_forward.1
= control target key start
LH: loop header
LB: loop body
LE: loop exit
PB: predicated region body
PF: predicated region fallthrough
CT: control target
= control target key end

     0   :  { %s3644_s27 = smov 0   ;;  %s4308_s0 = inlined_call_operand.vmem [shape: f32[8,256], index: 0, kind: input, shape index: {}, may-alias: {0,7}]   ;;  %s4309_s1 = inlined_call_operand.vmem [shape: f32[4,128,8], index: 1, kind: input, shape index: {}]   ;;  %s4310_s2 = inlined_call_operand.vmem [shape: f32[4,128,1], index: 2, kind: input, shape index: {}]   ;;  %s4311_s3 = inlined_call_operand.vmem [shape: f32[4,8,128], index: 3, kind: input, shape index: {}]   ;;  %s4312_s4 = inlined_call_operand.vmem [shape: f32[4,8,1], index: 4, kind: input, shape index: {}]   ;;  %s4313_s5 = inlined_call_operand.vmem [shape: f32[4,8,128], index: 5, kind: input, shape index: {}]   ;;  %s4314_s6 = inlined_call_operand.vmem [shape: f32[4,8,1], index: 6, kind: input, shape index: {}]   ;;  %s4315_s7 = inlined_call_operand.vmem [shape: f32[8,256], index: 7, kind: output, shape index: {0}, may-alias: {0,7}]   ;;  %s4316_s8 = inlined_call_operand.vmem [shape: f32[1,256], index: 8, kind: output, shape index: {1}]  }
   0x1 LB: > { %s2446_s28 = sadd.s32 4294967295, %s3592_s27   ;;  %p2450_p0 = scmp.ge.s32.totalorder %s3592_s27, 1  ;;  %s3592_s27 = sphi %s3644_s27, %s19_s27  }
   0x2   : > { %p264_p1 = scmp.lt.s32.totalorder %s3592_s27, 3 }
   0x4   : > { %p265_p2 = pnand %p2450_p0, %p264_p1 }
   0x5   : > { %v333_v0 = vld [vmem:[%s4310_s2 + $0x10] sm:$0xff] (!%p265_p2)  ;;  %v331_v1 = vld [vmem:[%s4310_s2] sm:$0xff] (!%p265_p2)  ;;  %p299_p3 = scmp.lt.s32.totalorder (!%p265_p2), %s2446_s28, 1  ;;  %vm427_vm0 = vcmask (!%p265_p2), 64512   ;;  %v3594_v2 = vmov (!%p265_p2), 0   ;;  %v334_v4 = vld [vmem:[%s4310_s2 + $0x18] sm:$0xff] (!%p265_p2) }
   0x6   : > { %268 = sbr.rel (%p265_p2) target bundleno = 2069 (0x815), region = 48  ;;  %3425 = vset.pattern.permute.xlu1 (!%p265_p2), %v3594_v2  ;;  %3424 = vset.pattern.permute.xlu0 (!%p265_p2), %v3594_v2  ;;  %v315_v3 = vld [vmem:[%s4309_s1] sm:$0xff] (!%p265_p2)  ;;  %v332_v5 = vld [vmem:[%s4310_s2 + $0x8] sm:$0xff] (!%p265_p2)  ;;  %v317_v10 = vld [vmem:[%s4309_s1 + $0x10] sm:$0xff] (!%p265_p2)  ;;  %vm3596_vm1 = vmmov (!%p265_p2), 0   ;;  %vm3598_vm4 = vmmov (!%p265_p2), 1  }
   0x7   : > { %359 = vperm.xlu1 (!%p265_p2), %3425, %v333_v0   ;;  %349 = vperm.xlu0 (!%p265_p2), %3424, %v331_v1   ;;  %v316_v7 = vld [vmem:[%s4309_s1 + $0x8] sm:$0xff] (!%p265_p2)  ;;  %v335_v9 = vld [vmem:[%s4310_s2 + $0x20] sm:$0xff] (!%p265_p2)  ;;  %v318_v11 = vld [vmem:[%s4309_s1 + $0x18] sm:$0xff] (!%p265_p2) }
   0x8   : > { %2837 = vmatprep.mubr.msk.f32.mxu0 (!%p265_p2), %vm427_vm0, %v315_v3  ;;  %v336_v8 = vld [vmem:[%s4310_s2 + $0x28] sm:$0xff] (!%p265_p2)  ;;  %v338_v12 = vld [vmem:[%s4310_s2 + $0x38] sm:$0xff] (!%p265_p2)  ;;  %v337_v13 = vld [vmem:[%s4310_s2 + $0x30] sm:$0xff] (!%p265_p2) }
   0x9   : > { %v319_v14 = vld [vmem:[%s4309_s1 + $0x20] sm:$0xff] (!%p265_p2)  ;;  %v320_v15 = vld [vmem:[%s4309_s1 + $0x28] sm:$0xff] (!%p265_p2)  ;;  %v321_v18 = vld [vmem:[%s4309_s1 + $0x30] sm:$0xff] (!%p265_p2) }
   0xa   : > { %v340_v16 = vld [vmem:[%s4310_s2 + $0x48] sm:$0xff] (!%p265_p2)  ;;  %v339_v17 = vld [vmem:[%s4310_s2 + $0x40] sm:$0xff] (!%p265_p2)  ;;  %v322_v19 = vld [vmem:[%s4309_s1 + $0x38] sm:$0xff] (!%p265_p2) }
   0xb   : > { %364 = vperm.xlu1 (!%p265_p2), %3425, %v334_v4   ;;  %354 = vperm.xlu0 (!%p265_p2), %3424, %v332_v5   ;;  %v342_v20 = vld [vmem:[%s4310_s2 + $0x58] sm:$0xff] (!%p265_p2)  ;;  %v341_v21 = vld [vmem:[%s4310_s2 + $0x50] sm:$0xff] (!%p265_p2)  ;;  %v323_v22 = vld [vmem:[%s4309_s1 + $0x40] sm:$0xff] (!%p265_p2) }
   0xc   : > { %v324_v23 = vld [vmem:[%s4309_s1 + $0x48] sm:$0xff] (!%p265_p2)  ;;  %v343_v25 = vld [vmem:[%s4310_s2 + $0x60] sm:$0xff] (!%p265_p2)  ;;  %v325_v26 = vld [vmem:[%s4309_s1 + $0x50] sm:$0xff] (!%p265_p2) }
   0xd   : > { %s4320_s28 = smov (!%p299_p3, %s2446_s28), 1  ;;  %v344_v24 = vld [vmem:[%s4310_s2 + $0x68] sm:$0xff]  ;;  %v326_v27 = vld [vmem:[%s4309_s1 + $0x58] sm:$0xff]  ;;  %v345_v29 = vld [vmem:[%s4310_s2 + $0x70] sm:$0xff] }
   0xe   : > { %s2451_s17 = sshll.u32 %s4320_s28, 3  ;;  %v346_v28 = vld [vmem:[%s4310_s2 + $0x78] sm:$0xff]  ;;  %v327_v30 = vld [vmem:[%s4309_s1 + $0x60] sm:$0xff]  ;;  %v328_v31 = vld [vmem:[%s4309_s1 + $0x68] sm:$0xff]  ;;  %s309_s18 = scalar_lea.vmem %s4316_s8, %s4320_s28 }
   0xf   : > { %s302_s20 = scalar_lea.vmem %s4308_s0, %s2451_s17  ;;  %374 = vperm.xlu1 %3425, %v336_v8   ;;  %369 = vperm.xlu0 %3424, %v335_v9   ;;  %v638_v32 = vld [vmem:[%s4312_s4] sm:$0xff]  ;;  %v329_v34 = vld [vmem:[%s4309_s1 + $0x70] sm:$0xff]  ;;  %v330_v35 = vld [vmem:[%s4309_s1 + $0x78] sm:$0xff]  ;;  %s306_s15 = scalar_lea.vmem %s4315_s7, %s2451_s17 }
  0x10   : > { %v3676_v6 = vld [vmem:[%s302_s20] sm:$0xff]  ;;  %v2487_v36 = vld [vmem:[%s4310_s2 + $0x88] sm:$0xff]  ;;  %v2489_v38 = vld [vmem:[%s4310_s2 + $0x98] sm:$0xff] }
  0x11   : > { %2835 = vmatprep.subr.mxu0 %v3676_v6  ;;  %v715_v33 = vld [vmem:[%s4314_s6] sm:$0xff]  ;;  %v2488_v39 = vld [vmem:[%s4310_s2 + $0x90] sm:$0xff]  ;;  %v2491_v40 = vld [vmem:[%s4310_s2 + $0xa8] sm:$0xff] }
  0x12   : > { %2836 = vmatpush3.msra.mxu0 %v3676_v6  ;;  %v2486_v37 = vld [vmem:[%s4310_s2 + $0x80] sm:$0xff]  ;;  %v2493_v42 = vld [vmem:[%s4310_s2 + $0xb8] sm:$0xff]  ;;  %v2492_v43 = vld [vmem:[%s4310_s2 + $0xb0] sm:$0xff] }
  0x13   : > { %2838 = vmatmul.mubr.msk.f32.vlgmr.msra.gmra.mrb[0].mxu0 %vm427_vm0, %v316_v7  ;;  %384 = vperm.xlu1 %3425, %v338_v12   ;;  %v2490_v41 = vld [vmem:[%s4310_s2 + $0xa0] sm:$0xff]  ;;  %v2495_v44 = vld [vmem:[%s4310_s2 + $0xc8] sm:$0xff]  ;;  %v2497_v46 = vld [vmem:[%s4310_s2 + $0xd8] sm:$0xff] }
  0x14   : > { %2840 = vmatprep.mubr.msk.f32.mxu0 %vm427_vm0, %v317_v10  ;;  %379 = vperm.xlu0 %3424, %v337_v13   ;;  %v2494_v45 = vld [vmem:[%s4310_s2 + $0xc0] sm:$0xff]  ;;  %v2496_v47 = vld [vmem:[%s4310_s2 + $0xd0] sm:$0xff]  ;;  %v2499_v48 = vld [vmem:[%s4310_s2 + $0xe8] sm:$0xff] }
  0x15   : > { %v2498_v49 = vld [vmem:[%s4310_s2 + $0xe0] sm:$0xff]  ;;  %v2501_v50 = vld [vmem:[%s4310_s2 + $0xf8] sm:$0xff]  ;;  %v2500_v51 = vld [vmem:[%s4310_s2 + $0xf0] sm:$0xff] }
  0x16   : > { %v2519_v52 = vld [vmem:[%s4312_s4 + $0x8] sm:$0xff]  ;;  %v2539_v55 = vld [vmem:[%s4310_s2 + $0x100] sm:$0xff]  ;;  %v2542_v56 = vld [vmem:[%s4310_s2 + $0x118] sm:$0xff] }
  0x17   : > { %2841 = vmatmul.mubr.msk.f32.gmra.mrb[2].mxu0 %vm427_vm0, %v318_v11  ;;  %394 = vperm.xlu1 %3425, %v340_v16   ;;  %v2521_v53 = vld [vmem:[%s4314_s6 + $0x8] sm:$0xff]  ;;  %v2541_v57 = vld [vmem:[%s4310_s2 + $0x110] sm:$0xff]  ;;  %v2543_v59 = vld [vmem:[%s4310_s2 + $0x120] sm:$0xff]  ;;  %v3595_v11 = vmov 0.0|0.0  }
  0x18   : > { %2843 = vmatprep.mubr.msk.f32.mxu0 %vm427_vm0, %v319_v14  ;;  %389 = vperm.xlu0 %3424, %v339_v17   ;;  %v2540_v54 = vld [vmem:[%s4310_s2 + $0x108] sm:$0xff]  ;;  %v2546_v60 = vld [vmem:[%s4310_s2 + $0x138] sm:$0xff]  ;;  %v2545_v61 = vld [vmem:[%s4310_s2 + $0x130] sm:$0xff] }
  0x19   : > { %v2544_v58 = vld [vmem:[%s4310_s2 + $0x128] sm:$0xff]  ;;  %v2547_v63 = vld [vmem:[%s4310_s2 + $0x140] sm:$0xff]  ;;  %v2550_v0 = vld [vmem:[%s4310_s2 + $0x158] sm:$0xff]  ;;  %3219 = vmatprep.subr.bf16.mxu1 %v3595_v11  ;;  %3243 = vmatprep.subr.bf16.mxu0 %v3595_v11 }
  0x1a   : > { %v2548_v62 = vld [vmem:[%s4310_s2 + $0x148] sm:$0xff]  ;;  %v2549_v1 = vld [vmem:[%s4310_s2 + $0x150] sm:$0xff]  ;;  %v2551_v3 = vld [vmem:[%s4310_s2 + $0x160] sm:$0xff] }
  0x1b   : > { %2844 = vmatmul.mubr.msk.f32.gmra.mrb[4].mxu0 %vm427_vm0, %v320_v15  ;;  %404 = vperm.xlu1 %3425, %v342_v20   ;;  %v2552_v2 = vld [vmem:[%s4310_s2 + $0x168] sm:$0xff]  ;;  %v2554_v4 = vld [vmem:[%s4310_s2 + $0x178] sm:$0xff]  ;;  %v2553_v5 = vld [vmem:[%s4310_s2 + $0x170] sm:$0xff] }
  0x1c   : > { %2846 = vmatprep.mubr.msk.f32.mxu0 %vm427_vm0, %v321_v18  ;;  %399 = vperm.xlu0 %3424, %v341_v21   ;;  %v2572_v7 = vld [vmem:[%s4312_s4 + $0x10] sm:$0xff]  ;;  %v2593_v9 = vld [vmem:[%s4310_s2 + $0x188] sm:$0xff]  ;;  %v2592_v10 = vld [vmem:[%s4310_s2 + $0x180] sm:$0xff] }
  0x1d   : > { %v2574_v8 = vld [vmem:[%s4314_s6 + $0x10] sm:$0xff]  ;;  %v2595_v12 = vld [vmem:[%s4310_s2 + $0x198] sm:$0xff]  ;;  %v2597_v14 = vld [vmem:[%s4310_s2 + $0x1a8] sm:$0xff] }
  0x1e   : > { %v2594_v13 = vld [vmem:[%s4310_s2 + $0x190] sm:$0xff]  ;;  %v2596_v15 = vld [vmem:[%s4310_s2 + $0x1a0] sm:$0xff]  ;;  %v2599_v16 = vld [vmem:[%s4310_s2 + $0x1b8] sm:$0xff] }
  0x1f   : > { %2847 = vmatmul.mubr.msk.f32.gmra.mrb[6].mxu0 %vm427_vm0, %v322_v19  ;;  %414 = vperm.xlu1 %3425, %v344_v24   ;;  %v2598_v17 = vld [vmem:[%s4310_s2 + $0x1b0] sm:$0xff]  ;;  %v2601_v18 = vld [vmem:[%s4310_s2 + $0x1c8] sm:$0xff]  ;;  %v2600_v19 = vld [vmem:[%s4310_s2 + $0x1c0] sm:$0xff] }
  0x20   : > { %2849 = vmatprep.mubr.msk.f32.mxu0 %vm427_vm0, %v323_v22  ;;  %409 = vperm.xlu0 %3424, %v343_v25   ;;  %v2603_v20 = vld [vmem:[%s4310_s2 + $0x1d8] sm:$0xff]  ;;  %v2602_v21 = vld [vmem:[%s4310_s2 + $0x1d0] sm:$0xff]  ;;  %v2605_v22 = vld [vmem:[%s4310_s2 + $0x1e8] sm:$0xff] }
  0x21   : > { %v2607_v24 = vld [vmem:[%s4310_s2 + $0x1f8] sm:$0xff]  ;;  %v2606_v25 = vld [vmem:[%s4310_s2 + $0x1f0] sm:$0xff] }
  0x23   : > { %2850 = vmatmul.mubr.msk.f32.gmra.mrb[8].mxu0 %vm427_vm0, %v324_v23  ;;  %424 = vperm.xlu1 %3425, %v346_v28   ;;  %v2604_v23 = vld [vmem:[%s4310_s2 + $0x1e0] sm:$0xff]  ;;  %v3597_v28 = vmov 0.0  }
  0x24   : > { %2852 = vmatprep.mubr.msk.f32.mxu0 %vm427_vm0, %v325_v26  ;;  %419 = vperm.xlu0 %3424, %v345_v29   ;;  %v2625_v26 = vld [vmem:[%s4312_s4 + $0x18] sm:$0xff] }
  0x25   : > { %2893 = vmatprep.mubr.msk.f32.mxu1 %vm3596_vm1, %v3597_v28 }
  0x27   : > { %2853 = vmatmul.mubr.msk.f32.gmra.mrb[10].mxu0 %vm427_vm0, %v326_v27  ;;  %641 = vperm.xlu1 %3425, %v638_v32   ;;  %v2627_v27 = vld [vmem:[%s4314_s6 + $0x18] sm:$0xff] }
  0x28   : > { %2855 = vmatprep.mubr.msk.f32.mxu0 %vm427_vm0, %v327_v30  ;;  %718 = vperm.xlu0 %3424, %v715_v33  }
  0x2b   : > { %2856 = vmatmul.mubr.msk.f32.gmra.mrb[12].mxu0 %vm427_vm0, %v328_v31  ;;  %865 = vperm.xlu1 %3425, %v2487_v36  }
  0x2c   : > { %2858 = vmatprep.mubr.msk.f32.mxu0 %vm427_vm0, %v329_v34  ;;  %860 = vperm.xlu0 %3424, %v2486_v37  }
  0x2f   : > { %2859 = vmatmul.mubr.msk.f32.gmra.mrb[14].mxu0 %vm427_vm0, %v330_v35  ;;  %875 = vperm.xlu1 %3425, %v2489_v38  }
  0x30   : > { %870 = vperm.xlu0 %3424, %v2488_v39   ;;  %2928 = vmatprep.mubr.msk.f32.mxu0 %vm3596_vm1, %v3597_v28 }
  0x33   : > { %885 = vperm.xlu1 %3425, %v2491_v40  }
  0x34   : > { %880 = vperm.xlu0 %3424, %v2490_v41  }
  0x37   : > { %895 = vperm.xlu1 %3425, %v2493_v42  }
  0x38   : > { %890 = vperm.xlu0 %3424, %v2492_v43  }
  0x3b   : > { %905 = vperm.xlu1 %3425, %v2495_v44  }
  0x3c   : > { %900 = vperm.xlu0 %3424, %v2494_v45  }
  0x3f   : > { %915 = vperm.xlu1 %3425, %v2497_v46  }
  0x40   : > { %910 = vperm.xlu0 %3424, %v2496_v47  }
  0x43   : > { %925 = vperm.xlu1 %3425, %v2499_v48  }
  0x44   : > { %920 = vperm.xlu0 %3424, %v2498_v49  }
  0x47   : > { %935 = vperm.xlu1 %3425, %v2501_v50  }
  0x48   : > { %930 = vperm.xlu0 %3424, %v2500_v51  }
  0x4b   : > { %1153 = vperm.xlu1 %3425, %v2519_v52  }
  0x4c   : > { %1232 = vperm.xlu0 %3424, %v2521_v53  }
  0x4f   : > { %1379 = vperm.xlu1 %3425, %v2540_v54  }
  0x50   : > { %1374 = vperm.xlu0 %3424, %v2539_v55  }
  0x53   : > { %1389 = vperm.xlu1 %3425, %v2542_v56  }
  0x54   : > { %1384 = vperm.xlu0 %3424, %v2541_v57  }
  0x57   : > { %1399 = vperm.xlu1 %3425, %v2544_v58  }
  0x58   : > { %1394 = vperm.xlu0 %3424, %v2543_v59  }
  0x5b   : > { %1409 = vperm.xlu1 %3425, %v2546_v60  }
  0x5c   : > { %1404 = vperm.xlu0 %3424, %v2545_v61  }
  0x5f   : > { %1419 = vperm.xlu1 %3425, %v2548_v62  }
  0x60   : > { %1414 = vperm.xlu0 %3424, %v2547_v63  }
  0x63   : > { %1429 = vperm.xlu1 %3425, %v2550_v0  }
  0x64   : > { %1424 = vperm.xlu0 %3424, %v2549_v1  }
  0x67   : > { %1439 = vperm.xlu1 %3425, %v2552_v2  }
  0x68   : > { %1434 = vperm.xlu0 %3424, %v2551_v3  }
  0x6b   : > { %1449 = vperm.xlu1 %3425, %v2554_v4  }
  0x6c   : > { %1444 = vperm.xlu0 %3424, %v2553_v5  }
  0x6f   : > { %1667 = vperm.xlu1 %3425, %v2572_v7  }
  0x70   : > { %1746 = vperm.xlu0 %3424, %v2574_v8  }
  0x73   : > { %1893 = vperm.xlu1 %3425, %v2593_v9  }
  0x74   : > { %1888 = vperm.xlu0 %3424, %v2592_v10  }
  0x77   : > { %1903 = vperm.xlu1 %3425, %v2595_v12  }
  0x78   : > { %1898 = vperm.xlu0 %3424, %v2594_v13  }
  0x7b   : > { %1913 = vperm.xlu1 %3425, %v2597_v14  }
  0x7c   : > { %1908 = vperm.xlu0 %3424, %v2596_v15  }
  0x7f   : > { %1923 = vperm.xlu1 %3425, %v2599_v16  }
  0x80   : > { %1918 = vperm.xlu0 %3424, %v2598_v17  }
  0x83   : > { %1933 = vperm.xlu1 %3425, %v2601_v18  }
  0x84   : > { %1928 = vperm.xlu0 %3424, %v2600_v19  }
  0x86   : > { %v360_v29 = vpop.permute.xlu1 %359  ;;  %v350_v30 = vpop.permute.xlu0 %349 }
  0x87   : > { %1943 = vperm.xlu1 %3425, %v2603_v20  }
  0x88   : > { %1938 = vperm.xlu0 %3424, %v2602_v21  }
  0x8a   : > { %v365_v31 = vpop.permute.xlu1 %364  ;;  %v355_v32 = vpop.permute.xlu0 %354 }
  0x8b   : > { %1953 = vperm.xlu1 %3425, %v2605_v22  }
  0x8c   : > { %1948 = vperm.xlu0 %3424, %v2604_v23  }
  0x8e   : > { %v375_v33 = vpop.permute.xlu1 %374  ;;  %v370_v34 = vpop.permute.xlu0 %369 }
  0x8f   : > { %1963 = vperm.xlu1 %3425, %v2607_v24  }
  0x90   : > { %1958 = vperm.xlu0 %3424, %v2606_v25  }
  0x92   : > { %v385_v39 = vpop.permute.xlu1 %384 }
  0x93   : > { %2181 = vperm.xlu1 %3425, %v2625_v26   ;;  %v380_v42 = vpop.permute.xlu0 %379 }
  0x94   : > { %2260 = vperm.xlu0 %3424, %v2627_v27  }
  0x96   : > { %v395_v47 = vpop.permute.xlu1 %394 }
  0x97   : > { %v390_v50 = vpop.permute.xlu0 %389 }
  0x9a   : > { %v405_v57 = vpop.permute.xlu1 %404 }
  0x9b   : > { %v400_v62 = vpop.permute.xlu0 %399 }
  0x9e   : > { %v415_v7 = vpop.permute.xlu1 %414 }
  0x9f   : > { %v410_v12 = vpop.permute.xlu0 %409 }
  0xa2   : > { %v425_v20 = vpop.permute.xlu1 %424 }
  0xa3   : > { %v420_v25 = vpop.permute.xlu0 %419 }
  0xe6   : > { %v2839_v35 = vpop.f32.mrb[0].mxu0 }
  0xe7   : > { %v548_v36 = vadd.f32 %v2839_v35, %v355_v32  ;;  %v542_v37 = vpop.f32.mrb[1].mxu0 }
  0xe8   : > { %v543_v38 = vadd.f32 %v542_v37, %v350_v30 }
  0xe9   : > { %3426 = vtanh.f32 %v548_v36 }
  0xea   : > { %v2842_v40 = vpop.f32.mrb[2].mxu0  ;;  %3428 = vtanh.f32 %v543_v38 }
  0xeb   : > { %v558_v41 = vadd.f32 %v2842_v40, %v365_v31  ;;  %v552_v43 = vpop.f32.mrb[3].mxu0  ;;  %v637_v40 = vld [vmem:[%s4311_s3] sm:$0xff] }
  0xec   : > { %v553_v44 = vadd.f32 %v552_v43, %v360_v29  ;;  %v719_v43 = vpop.permute.xlu0 %718 }
  0xed   : > { %3430 = vtanh.f32 %v558_v41  ;;  %v714_v41 = vld [vmem:[%s4313_s5] sm:$0xff] }
  0xee   : > { %v2845_v45 = vpop.f32.mrb[4].mxu0  ;;  %3432 = vtanh.f32 %v553_v44 }
  0xef   : > { %v568_v46 = vadd.f32 %v2845_v45, %v375_v33  ;;  %v562_v48 = vpop.f32.mrb[5].mxu0 }
  0xf0   : > { %v563_v49 = vadd.f32 %v562_v48, %v370_v34 }
  0xf1   : > { %3434 = vtanh.f32 %v568_v46 }
  0xf2   : > { %v2848_v51 = vpop.f32.mrb[6].mxu0  ;;  %3436 = vtanh.f32 %v563_v49 }
  0xf3   : > { %v3427_v52 = vpop.eup %3426  ;;  %v578_v53 = vadd.f32 %v2848_v51, %v385_v39  ;;  %v572_v54 = vpop.f32.mrb[7].mxu0 }
  0xf4   : > { %v3429_v55 = vpop.eup %3428  ;;  %v573_v56 = vadd.f32 %v572_v54, %v380_v42  ;;  %v2470_v42 = vld [vmem:[%s4309_s1 + $0x80] sm:$0xff] }
  0xf5   : > { %3438 = vtanh.f32 %v578_v53  ;;  %v3220_v59 = vpack.c.bf16 %v3427_v52, %v3429_v55  ;;  %v311_v53 = vlaneseq }
  0xf6   : > { %v2851_v58 = vpop.f32.mrb[8].mxu0  ;;  %3440 = vtanh.f32 %v573_v56  ;;  %v642_v56 = vpop.permute.xlu1 %641 }
  0xf7   : > { %v3431_v60 = vpop.eup %3430  ;;  %v588_v61 = vadd.f32 %v2851_v58, %v395_v47  ;;  %v582_v63 = vpop.f32.mrb[9].mxu0  ;;  %3221 = vmatpush3.bf16.msra.mxu1 %v3220_v59  ;;  %3245 = vmatpush3.bf16.msra.mxu0 %v3220_v59  ;;  %v3980_v54 = vshrl.u32 %v311_v53, 7 }
  0xf8   : > { %v3433_v0 = vpop.eup %3432  ;;  %v583_v1 = vadd.f32 %v582_v63, %v390_v50  ;;  %3222 = vmatprep.subr.bf16.mxu1 %v3595_v11  ;;  %3246 = vmatprep.subr.bf16.mxu0 %v3595_v11  ;;  %v2474_v63 = vld [vmem:[%s4309_s1 + $0xa0] sm:$0xff] }
  0xf9   : > { %3442 = vtanh.f32 %v588_v61  ;;  %v3223_v3 = vpack.c.bf16 %v3431_v60, %v3433_v0  ;;  %vm313_vm2 = vcmp.lt.s32.totalorder %v3980_v54, 4  ;;  %v2471_v61 = vld [vmem:[%s4309_s1 + $0x88] sm:$0xff] }
  0xfa   : > { %v2854_v2 = vpop.f32.mrb[10].mxu0  ;;  %3444 = vtanh.f32 %v583_v1  ;;  %v2475_v0 = vld [vmem:[%s4309_s1 + $0xa8] sm:$0xff]  ;;  %v2476_v1 = vld [vmem:[%s4309_s1 + $0xb0] sm:$0xff]  ;;  %vm4088_vm5 = vmxor %vm313_vm2, %vm3598_vm4 }
  0xfb   : > { %v3435_v4 = vpop.eup %3434  ;;  %v598_v5 = vadd.f32 %v2854_v2, %v405_v57  ;;  %v592_v8 = vpop.f32.mrb[11].mxu0  ;;  %3224 = vmatpush3.bf16.msra.mxu1 %v3223_v3  ;;  %3248 = vmatpush3.bf16.msra.mxu0 %v3223_v3  ;;  %v2477_v2 = vld [vmem:[%s4309_s1 + $0xb8] sm:$0xff]  ;;  %v2478_v3 = vld [vmem:[%s4309_s1 + $0xc0] sm:$0xff] }
  0xfc   : > { %v3437_v9 = vpop.eup %3436  ;;  %v593_v10 = vadd.f32 %v592_v8, %v400_v62  ;;  %3225 = vmatprep.subr.bf16.mxu1 %v3595_v11  ;;  %3249 = vmatprep.subr.bf16.mxu0 %v3595_v11  ;;  %v2472_v62 = vld [vmem:[%s4309_s1 + $0x90] sm:$0xff]  ;;  %v2482_v8 = vld [vmem:[%s4309_s1 + $0xe0] sm:$0xff] }
  0xfd   : > { %3446 = vtanh.f32 %v598_v5  ;;  %v3226_v14 = vpack.c.bf16 %v3435_v4, %v3437_v9  ;;  %v2479_v4 = vld [vmem:[%s4309_s1 + $0xc8] sm:$0xff]  ;;  %v2480_v5 = vld [vmem:[%s4309_s1 + $0xd0] sm:$0xff] }
  0xfe   : > { %v2857_v13 = vpop.f32.mrb[12].mxu0  ;;  %3448 = vtanh.f32 %v593_v10  ;;  %v2483_v9 = vld [vmem:[%s4309_s1 + $0xe8] sm:$0xff]  ;;  %v2484_v10 = vld [vmem:[%s4309_s1 + $0xf0] sm:$0xff] }
  0xff   : > { %v3439_v15 = vpop.eup %3438  ;;  %v608_v16 = vadd.f32 %v2857_v13, %v415_v7  ;;  %v602_v17 = vpop.f32.mrb[13].mxu0  ;;  %3227 = vmatpush3.bf16.msra.mxu1 %v3226_v14  ;;  %3251 = vmatpush3.bf16.msra.mxu0 %v3226_v14  ;;  %v2481_v7 = vld [vmem:[%s4309_s1 + $0xd8] sm:$0xff] }
 0x100   : > { %v3441_v18 = vpop.eup %3440  ;;  %v603_v19 = vadd.f32 %v602_v17, %v410_v12  ;;  %3228 = vmatprep.subr.bf16.mxu1 %v3595_v11  ;;  %3252 = vmatprep.subr.bf16.mxu0 %v3595_v11  ;;  %v2485_v12 = vld [vmem:[%s4309_s1 + $0xf8] sm:$0xff]  ;;  %v866_v13 = vpop.permute.xlu1 %865 }
 0x101   : > { %3450 = vtanh.f32 %v608_v16  ;;  %v3229_v22 = vpack.c.bf16 %v3439_v15, %v3441_v18  ;;  %v861_v14 = vpop.permute.xlu0 %860 }
 0x102   : > { %v2860_v21 = vpop.f32.mrb[14].mxu0  ;;  %3452 = vtanh.f32 %v603_v19 }
 0x103   : > { %v3443_v23 = vpop.eup %3442  ;;  %v618_v24 = vadd.f32 %v2860_v21, %v425_v20  ;;  %v612_v26 = vpop.f32.mrb[15].mxu0  ;;  %3230 = vmatpush3.bf16.msra.mxu1 %v3229_v22  ;;  %3254 = vmatpush3.bf16.msra.mxu0 %v3229_v22 }
 0x104   : > { %v3445_v27 = vpop.eup %3444  ;;  %v613_v29 = vadd.f32 %v612_v26, %v420_v25  ;;  %3231 = vmatprep.subr.bf16.mxu1 %v3595_v11  ;;  %3255 = vmatprep.subr.bf16.mxu0 %v3595_v11  ;;  %v876_v15 = vpop.permute.xlu1 %875 }
 0x105   : > { %3454 = vtanh.f32 %v618_v24  ;;  %v3232_v30 = vpack.c.bf16 %v3443_v23, %v3445_v27  ;;  %v871_v16 = vpop.permute.xlu0 %870 }
 0x106   : > { %3456 = vtanh.f32 %v613_v29 }
 0x107   : > { %v3447_v31 = vpop.eup %3446  ;;  %3233 = vmatpush3.bf16.msra.mxu1 %v3232_v30  ;;  %3257 = vmatpush3.bf16.msra.mxu0 %v3232_v30 }
 0x108   : > { %v3449_v32 = vpop.eup %3448  ;;  %3234 = vmatprep.subr.bf16.mxu1 %v3595_v11  ;;  %3258 = vmatprep.subr.bf16.mxu0 %v3595_v11  ;;  %v886_v17 = vpop.permute.xlu1 %885 }
 0x109   : > { %v3235_v33 = vpack.c.bf16 %v3447_v31, %v3449_v32  ;;  %v881_v18 = vpop.permute.xlu0 %880 }
 0x10b   : > { %v3451_v34 = vpop.eup %3450  ;;  %3236 = vmatpush3.bf16.msra.mxu1 %v3235_v33  ;;  %3260 = vmatpush3.bf16.msra.mxu0 %v3235_v33 }
 0x10c   : > { %v3453_v35 = vpop.eup %3452  ;;  %3237 = vmatprep.subr.bf16.mxu1 %v3595_v11  ;;  %3261 = vmatprep.subr.bf16.mxu0 %v3595_v11  ;;  %v896_v23 = vpop.permute.xlu1 %895 }
 0x10d   : > { %v3238_v36 = vpack.c.bf16 %v3451_v34, %v3453_v35  ;;  %v891_v25 = vpop.permute.xlu0 %890 }
 0x10f   : > { %v3455_v37 = vpop.eup %3454  ;;  %3239 = vmatpush3.bf16.msra.mxu1 %v3238_v36  ;;  %3263 = vmatpush3.bf16.msra.mxu0 %v3238_v36 }
 0x110   : > { %v3457_v38 = vpop.eup %3456  ;;  %3240 = vmatprep.subr.bf16.mxu1 %v3595_v11  ;;  %3264 = vmatprep.subr.bf16.mxu0 %v3595_v11  ;;  %v906_v33 = vpop.permute.xlu1 %905 }
 0x111   : > { %v3241_v39 = vpack.c.bf16 %v3455_v37, %v3457_v38  ;;  %v901_v35 = vpop.permute.xlu0 %900 }
 0x113   : > { %3242 = vmatpush3.bf16.msra.mxu1 %v3241_v39  ;;  %3266 = vmatpush3.bf16.msra.mxu0 %v3241_v39 }
 0x114   : > { %3267 = vmatprep.subr.bf16.mxu0 %v3595_v11 }
 0x116   : > { %2894 = vmatmul.mubr.f32.vlgmr.msra.gmra.mrb[0].mxu1 %v637_v40  ;;  %2929 = vmatmul.mubr.f32.vlgmr.msra.gmra.mrb[16].mxu0 %v714_v41 }
 0x117   : > { %2989 = vmatprep.mubr.msk.f32.mxu0 %vm3596_vm1, %v3597_v28  ;;  %2933 = vmatprep.mubr.msk.f32.mxu1 %vm427_vm0, %v2470_v42 }
 0x1e9   : > { %v710_v44 = vpop.f32.mrb[0].mxu1  ;;  %v787_v45 = vpop.f32.mrb[16].mxu0 }
 0x1ea   : > { %v788_v46 = vadd.f32 %v787_v45, %v719_v43  ;;  %v2930_v47 = vpop.f32.mrb[17].mxu0  ;;  %v2895_v48 = vpop.f32.mrb[1].mxu1  ;;  %v711_v57 = vadd.f32 %v710_v44, %v642_v56 }
 0x1eb   : > { %v916_v43 = vpop.permute.xlu1 %915 }
 0x1ec   : > { %v3977_v49 = vadd.f32 5.0, %v788_v46  ;;  %v911_v46 = vpop.permute.xlu0 %910 }
 0x1ee   : > { %v2469_v50 = vmul.f32 -1.442695, %v3977_v49 }
 0x1f0   : > { %3458 = vpow2.f32 %v2469_v50 }
 0x1fa   : > { %v3459_v51 = vpop.eup %3458 }
 0x1fb   : > { %v795_v52 = vadd.f32 1.0, %v3459_v51 }
 0x1fd   : > { %3460 = vrcp.f32 %v795_v52 }
 0x207   : > { %v3461_v55 = vpop.eup %3460 }
 0x208   : > { %v813_v58 = vmul.f32 %v3461_v55, %v3676_v6 }
 0x20a   : > { %v814_v59 = vadd.f32 %v813_v58, %v711_v57 }
 0x20c   : > { %v3987_v60 = vsel %vm313_vm2, %v3676_v6, %v814_v59  ;;  %v2473_v6 = vld [vmem:[%s4309_s1 + $0x98] sm:$0xff]  ;;  %v926_v59 = vpop.permute.xlu1 %925 }
 0x20d   : > { %2931 = vmatprep.subr.mxu1 %v3987_v60 }
 0x20e   : > { %2932 = vmatpush3.msra.mxu1 %v3987_v60 }
 0x20f   : > { %2934 = vmatmul.mubr.msk.f32.vlgmr.msra.gmra.mrb[2].mxu1 %vm427_vm0, %v2471_v61  ;;  %3291 = vmatprep.subr.bf16.mxu1 %v3595_v11 }
 0x210   : > { %2936 = vmatprep.mubr.msk.f32.mxu1 %vm427_vm0, %v2472_v62  ;;  %v921_v62 = vpop.permute.xlu0 %920 }
 0x213   : > { %2937 = vmatmul.mubr.msk.f32.gmra.mrb[4].mxu1 %vm427_vm0, %v2473_v6 }
 0x214   : > { %2939 = vmatprep.mubr.msk.f32.mxu1 %vm427_vm0, %v2474_v63 }
 0x217   : > { %2940 = vmatmul.mubr.msk.f32.gmra.mrb[6].mxu1 %vm427_vm0, %v2475_v0 }
 0x218   : > { %2942 = vmatprep.mubr.msk.f32.mxu1 %vm427_vm0, %v2476_v1 }
 0x21b   : > { %2943 = vmatmul.mubr.msk.f32.gmra.mrb[8].mxu1 %vm427_vm0, %v2477_v2 }
 0x21c   : > { %2945 = vmatprep.mubr.msk.f32.mxu1 %vm427_vm0, %v2478_v3 }
 0x21f   : > { %2946 = vmatmul.mubr.msk.f32.gmra.mrb[10].mxu1 %vm427_vm0, %v2479_v4 }
 0x220   : > { %2948 = vmatprep.mubr.msk.f32.mxu1 %vm427_vm0, %v2480_v5 }
 0x223   : > { %2949 = vmatmul.mubr.msk.f32.gmra.mrb[12].mxu1 %vm427_vm0, %v2481_v7  ;;  %v936_v7 = vpop.permute.xlu1 %935 }
 0x224   : > { %2951 = vmatprep.mubr.msk.f32.mxu1 %vm427_vm0, %v2482_v8 }
 0x227   : > { %2952 = vmatmul.mubr.msk.f32.gmra.mrb[14].mxu1 %vm427_vm0, %v2483_v9 }
 0x228   : > { %2954 = vmatprep.mubr.msk.f32.mxu1 %vm427_vm0, %v2484_v10  ;;  %v931_v10 = vpop.permute.xlu0 %930 }
 0x22b   : > { %2955 = vmatmul.mubr.msk.f32.gmra.mrb[16].mxu1 %vm427_vm0, %v2485_v12 }
 0x22c   : > { %3024 = vmatprep.mubr.msk.f32.mxu1 %vm3596_vm1, %v3597_v28 }
 0x2e2   : > { %v2935_v19 = vpop.f32.mrb[2].mxu1 }
 0x2e3   : > { %v1058_v20 = vadd.f32 %v2935_v19, %v866_v13  ;;  %v1052_v21 = vpop.f32.mrb[3].mxu1 }
 0x2e4   : > { %v1053_v22 = vadd.f32 %v1052_v21, %v861_v14 }
 0x2e5   : > { %3462 = vtanh.f32 %v1058_v20 }
 0x2e6   : > { %3464 = vtanh.f32 %v1053_v22  ;;  %v2938_v24 = vpop.f32.mrb[4].mxu1 }
 0x2e7   : > { %v1068_v26 = vadd.f32 %v2938_v24, %v876_v15  ;;  %v1062_v27 = vpop.f32.mrb[5].mxu1 }
 0x2e8   : > { %v1063_v29 = vadd.f32 %v1062_v27, %v871_v16  ;;  %v2520_v27 = vld [vmem:[%s4313_s5 + $0x8] sm:$0xff] }
 0x2e9   : > { %3466 = vtanh.f32 %v1068_v26  ;;  %v2518_v26 = vld [vmem:[%s4311_s3 + $0x8] sm:$0xff] }
 0x2ea   : > { %3468 = vtanh.f32 %v1063_v29  ;;  %v2941_v30 = vpop.f32.mrb[6].mxu1  ;;  %v2523_v29 = vld [vmem:[%s4309_s1 + $0x100] sm:$0xff] }
 0x2eb   : > { %v1078_v31 = vadd.f32 %v2941_v30, %v886_v17  ;;  %v1072_v32 = vpop.f32.mrb[7].mxu1  ;;  %v799_v30 = vand.u32 2147483647, %v3977_v49 }
 0x2ec   : > { %v1073_v34 = vadd.f32 %v1072_v32, %v881_v18 }
 0x2ed   : > { %3470 = vtanh.f32 %v1078_v31  ;;  %v800_v31 = vsub.f32 0.0, %v799_v30 }
 0x2ee   : > { %3472 = vtanh.f32 %v1073_v34  ;;  %v2944_v36 = vpop.f32.mrb[8].mxu1  ;;  %v1233_v34 = vpop.permute.xlu0 %1232 }
 0x2ef   : > { %v3463_v37 = vpop.eup %3462  ;;  %v1088_v38 = vadd.f32 %v2944_v36, %v896_v23  ;;  %v1082_v39 = vpop.f32.mrb[9].mxu1  ;;  %v801_v32 = vmul.f32 1.442695, %v800_v31  ;;  %v2530_v31 = vld [vmem:[%s4309_s1 + $0x138] sm:$0xff] }
 0x2f0   : > { %v3465_v40 = vpop.eup %3464  ;;  %v1083_v41 = vadd.f32 %v1082_v39, %v891_v25 }
 0x2f1   : > { %3474 = vtanh.f32 %v1088_v38  ;;  %v3268_v42 = vpack.c.bf16 %v3463_v37, %v3465_v40 }
 0x2f2   : > { %3476 = vtanh.f32 %v1083_v41  ;;  %v2947_v44 = vpop.f32.mrb[10].mxu1 }
 0x2f3   : > { %v3467_v45 = vpop.eup %3466  ;;  %v1098_v47 = vadd.f32 %v2947_v44, %v906_v33  ;;  %v1092_v48 = vpop.f32.mrb[11].mxu1  ;;  %3269 = vmatpush3.bf16.msra.mxu0 %v3268_v42  ;;  %3293 = vmatpush3.bf16.msra.mxu1 %v3268_v42 }
 0x2f4   : > { %v3469_v50 = vpop.eup %3468  ;;  %v1093_v51 = vadd.f32 %v1092_v48, %v901_v35  ;;  %3270 = vmatprep.subr.bf16.mxu0 %v3595_v11  ;;  %3294 = vmatprep.subr.bf16.mxu1 %v3595_v11 }
 0x2f5   : > { %3478 = vtanh.f32 %v1098_v47  ;;  %v3271_v52 = vpack.c.bf16 %v3467_v45, %v3469_v50 }
 0x2f6   : > { %3480 = vtanh.f32 %v1093_v51  ;;  %v2950_v53 = vpop.f32.mrb[12].mxu1 }
 0x2f7   : > { %v3471_v55 = vpop.eup %3470  ;;  %v1108_v56 = vadd.f32 %v2950_v53, %v916_v43  ;;  %v1102_v57 = vpop.f32.mrb[13].mxu1  ;;  %3272 = vmatpush3.bf16.msra.mxu0 %v3271_v52  ;;  %3296 = vmatpush3.bf16.msra.mxu1 %v3271_v52 }
 0x2f8   : > { %v3473_v58 = vpop.eup %3472  ;;  %v1103_v61 = vadd.f32 %v1102_v57, %v911_v46  ;;  %3273 = vmatprep.subr.bf16.mxu0 %v3595_v11  ;;  %3297 = vmatprep.subr.bf16.mxu1 %v3595_v11 }
 0x2f9   : > { %3482 = vtanh.f32 %v1108_v56  ;;  %v3274_v6 = vpack.c.bf16 %v3471_v55, %v3473_v58  ;;  %v798_v58 = vmin.f32 %v3977_v49, 0.0 }
 0x2fa   : > { %3484 = vtanh.f32 %v1103_v61  ;;  %v2953_v63 = vpop.f32.mrb[14].mxu1 }
 0x2fb   : > { %v3475_v0 = vpop.eup %3474  ;;  %v1118_v1 = vadd.f32 %v2953_v63, %v926_v59  ;;  %v1112_v2 = vpop.f32.mrb[15].mxu1  ;;  %3275 = vmatpush3.bf16.msra.mxu0 %v3274_v6  ;;  %3299 = vmatpush3.bf16.msra.mxu1 %v3274_v6 }
 0x2fc   : > { %v3477_v3 = vpop.eup %3476  ;;  %v1113_v4 = vadd.f32 %v1112_v2, %v921_v62  ;;  %3276 = vmatprep.subr.bf16.mxu0 %v3595_v11  ;;  %3300 = vmatprep.subr.bf16.mxu1 %v3595_v11 }
 0x2fd   : > { %3486 = vtanh.f32 %v1118_v1  ;;  %v3277_v5 = vpack.c.bf16 %v3475_v0, %v3477_v3  ;;  %v1154_v0 = vpop.permute.xlu1 %1153 }
 0x2fe   : > { %3488 = vtanh.f32 %v1113_v4  ;;  %v2956_v8 = vpop.f32.mrb[16].mxu1 }
 0x2ff   : > { %v3479_v9 = vpop.eup %3478  ;;  %v1128_v12 = vadd.f32 %v2956_v8, %v936_v7  ;;  %v1122_v13 = vpop.f32.mrb[17].mxu1  ;;  %3278 = vmatpush3.bf16.msra.mxu0 %v3277_v5  ;;  %3302 = vmatpush3.bf16.msra.mxu1 %v3277_v5 }
 0x300   : > { %v3481_v14 = vpop.eup %3480  ;;  %v1123_v15 = vadd.f32 %v1122_v13, %v931_v10  ;;  %3279 = vmatprep.subr.bf16.mxu0 %v3595_v11  ;;  %3303 = vmatprep.subr.bf16.mxu1 %v3595_v11 }
 0x301   : > { %3490 = vtanh.f32 %v1128_v12  ;;  %v3280_v16 = vpack.c.bf16 %v3479_v9, %v3481_v14  ;;  %v2524_v14 = vld [vmem:[%s4309_s1 + $0x108] sm:$0xff] }
 0x302   : > { %3492 = vtanh.f32 %v1123_v15 }
 0x303   : > { %v3483_v17 = vpop.eup %3482  ;;  %3281 = vmatpush3.bf16.msra.mxu0 %v3280_v16  ;;  %3305 = vmatpush3.bf16.msra.mxu1 %v3280_v16  ;;  %3494 = vpow2.f32 %v801_v32  ;;  %v2525_v16 = vld [vmem:[%s4309_s1 + $0x110] sm:$0xff]  ;;  %v2531_v32 = vld [vmem:[%s4309_s1 + $0x140] sm:$0xff] }
 0x304   : > { %v3485_v18 = vpop.eup %3484  ;;  %3282 = vmatprep.subr.bf16.mxu0 %v3595_v11  ;;  %3306 = vmatprep.subr.bf16.mxu1 %v3595_v11 }
 0x305   : > { %v3283_v19 = vpack.c.bf16 %v3483_v17, %v3485_v18 }
 0x307   : > { %v3487_v20 = vpop.eup %3486  ;;  %3284 = vmatpush3.bf16.msra.mxu0 %v3283_v19  ;;  %3308 = vmatpush3.bf16.msra.mxu1 %v3283_v19  ;;  %v2526_v19 = vld [vmem:[%s4309_s1 + $0x118] sm:$0xff] }
 0x308   : > { %v3489_v21 = vpop.eup %3488  ;;  %3285 = vmatprep.subr.bf16.mxu0 %v3595_v11  ;;  %3309 = vmatprep.subr.bf16.mxu1 %v3595_v11 }
 0x309   : > { %v3286_v22 = vpack.c.bf16 %v3487_v20, %v3489_v21  ;;  %v2527_v21 = vld [vmem:[%s4309_s1 + $0x120] sm:$0xff] }
 0x30b   : > { %v3491_v23 = vpop.eup %3490  ;;  %3287 = vmatpush3.bf16.msra.mxu0 %v3286_v22  ;;  %3311 = vmatpush3.bf16.msra.mxu1 %v3286_v22 }
 0x30c   : > { %v3493_v24 = vpop.eup %3492  ;;  %3288 = vmatprep.subr.bf16.mxu0 %v3595_v11  ;;  %3312 = vmatprep.subr.bf16.mxu1 %v3595_v11 }
 0x30d   : > { %v3289_v25 = vpack.c.bf16 %v3491_v23, %v3493_v24  ;;  %v3495_v33 = vpop.eup %3494 }
 0x30e   : > { %v803_v35 = vadd.f32 1.0, %v3495_v33  ;;  %v806_v46 = vmul.f32 -0.5, %v3495_v33  ;;  %v809_v50 = vand.u32 2147483647, %v3495_v33 }
 0x30f   : > { %3290 = vmatpush3.bf16.msra.mxu0 %v3289_v25  ;;  %3314 = vmatpush3.bf16.msra.mxu1 %v3289_v25  ;;  %v2528_v25 = vld [vmem:[%s4309_s1 + $0x128] sm:$0xff] }
 0x310   : > { %3315 = vmatprep.subr.bf16.mxu1 %v3595_v11  ;;  %3496 = vlog2.f32 %v803_v35  ;;  %v807_v48 = vadd.f32 1.0, %v806_v46  ;;  %vm810_vm3 = vcmp.lt.f32.partialorder %v809_v50, 0.0004427343 }
 0x312   : > { %2990 = vmatmul.mubr.f32.vlgmr.msra.gmra.mrb[18].mxu0 %v2518_v26  ;;  %3025 = vmatmul.mubr.f32.vlgmr.msra.gmra.mrb[18].mxu1 %v2520_v27  ;;  %v808_v55 = vmul.f32 %v3495_v33, %v807_v48  ;;  %v2529_v26 = vld [vmem:[%s4309_s1 + $0x130] sm:$0xff] }
 0x313   : > { %3085 = vmatprep.mubr.msk.f32.mxu1 %vm3596_vm1, %v3597_v28  ;;  %3029 = vmatprep.mubr.msk.f32.mxu0 %vm427_vm0, %v2523_v29 }
 0x31a   : > { %v3497_v47 = vpop.eup %3496 }
 0x31b   : > { %v805_v52 = vmul.f32 0.6931472, %v3497_v47 }
 0x31d   : > { %v811_v57 = vsel %vm810_vm3, %v808_v55, %v805_v52 }
 0x31e   : > { %v812_v61 = vsub.f32 %v798_v58, %v811_v57 }
 0x320   : > { %v816_v6 = vsel %vm313_vm2, 0.0, %v812_v61 }
 0x321   : > { %v817_v1 = vrot.slane %v816_v6, 4 }
 0x323   : > { %v818_v9 = vadd.f32 %v817_v1, %v816_v6 }
 0x3e5   : > { %v1222_v36 = vpop.f32.mrb[18].mxu0  ;;  %v1301_v37 = vpop.f32.mrb[18].mxu1 }
 0x3e6   : > { %v1302_v38 = vadd.f32 %v1301_v37, %v1233_v34  ;;  %v3026_v39 = vpop.f32.mrb[19].mxu1  ;;  %v2991_v40 = vpop.f32.mrb[19].mxu0  ;;  %v1223_v2 = vadd.f32 %v1222_v36, %v1154_v0  ;;  %v2532_v36 = vld [vmem:[%s4309_s1 + $0x148] sm:$0xff]  ;;  %v2533_v37 = vld [vmem:[%s4309_s1 + $0x150] sm:$0xff] }
 0x3e7   : > { %v2534_v39 = vld [vmem:[%s4309_s1 + $0x158] sm:$0xff]  ;;  %v2535_v40 = vld [vmem:[%s4309_s1 + $0x160] sm:$0xff] }
 0x3e8   : > { %v1305_v41 = vadd.f32 5.0, %v1302_v38 }
 0x3ea   : > { %v2522_v42 = vmul.f32 -1.442695, %v1305_v41  ;;  %v1313_v43 = vand.u32 2147483647, %v1305_v41  ;;  %v1312_v15 = vmin.f32 %v1305_v41, 0.0  ;;  %v2536_v41 = vld [vmem:[%s4309_s1 + $0x168] sm:$0xff] }
 0x3ec   : > { %3498 = vpow2.f32 %v2522_v42  ;;  %v1314_v44 = vsub.f32 0.0, %v1313_v43  ;;  %v2537_v42 = vld [vmem:[%s4309_s1 + $0x170] sm:$0xff]  ;;  %v2538_v43 = vld [vmem:[%s4309_s1 + $0x178] sm:$0xff] }
 0x3ee   : > { %v1315_v45 = vmul.f32 1.442695, %v1314_v44  ;;  %v1380_v44 = vpop.permute.xlu1 %1379 }
 0x3f0   : > { %3500 = vpow2.f32 %v1315_v45  ;;  %v1375_v45 = vpop.permute.xlu0 %1374 }
 0x3f2   : > { %v1390_v46 = vpop.permute.xlu1 %1389 }
 0x3f4   : > { %v1385_v47 = vpop.permute.xlu0 %1384 }
 0x3f6   : > { %v3499_v51 = vpop.eup %3498  ;;  %v1400_v48 = vpop.permute.xlu1 %1399 }
 0x3f7   : > { %v1309_v53 = vadd.f32 1.0, %v3499_v51 }
 0x3f8   : > { %v1395_v50 = vpop.permute.xlu0 %1394 }
 0x3f9   : > { %3502 = vrcp.f32 %v1309_v53 }
 0x3fa   : > { %v3501_v56 = vpop.eup %3500 }
 0x3fb   : > { %v1317_v59 = vadd.f32 1.0, %v3501_v56  ;;  %v1320_v62 = vmul.f32 -0.5, %v3501_v56  ;;  %v1323_v5 = vand.u32 2147483647, %v3501_v56 }
 0x3fc   : > { %v1405_v58 = vpop.permute.xlu0 %1404 }
 0x3fd   : > { %3504 = vlog2.f32 %v1317_v59  ;;  %v1321_v3 = vadd.f32 1.0, %v1320_v62  ;;  %vm1324_vm6 = vcmp.lt.f32.partialorder %v1323_v5, 0.0004427343 }
 0x3ff   : > { %v1322_v12 = vmul.f32 %v3501_v56, %v1321_v3  ;;  %v1410_v56 = vpop.permute.xlu1 %1409 }
 0x400   : > { %v1415_v3 = vpop.permute.xlu0 %1414 }
 0x403   : > { %v3503_v63 = vpop.eup %3502  ;;  %v1420_v1 = vpop.permute.xlu1 %1419 }
 0x404   : > { %v1327_v4 = vmul.f32 %v3503_v63, %v3987_v60 }
 0x406   : > { %v1328_v7 = vadd.f32 %v1327_v4, %v1223_v2 }
 0x407   : > { %v3505_v8 = vpop.eup %3504 }
 0x408   : > { %v1319_v10 = vmul.f32 0.6931472, %v3505_v8  ;;  %v4095_v13 = vsel %vm4088_vm5, %v3987_v60, %v1328_v7  ;;  %v819_v60 = vrot.slane %v818_v9, 2 }
 0x409   : > { %3027 = vmatprep.subr.mxu0 %v4095_v13 }
 0x40a   : > { %v1325_v17 = vsel %vm1324_vm6, %v1322_v12, %v1319_v10  ;;  %3028 = vmatpush3.msra.mxu0 %v4095_v13  ;;  %v820_v23 = vadd.f32 %v819_v60, %v818_v9 }
 0x40b   : > { %v1326_v18 = vsub.f32 %v1312_v15, %v1325_v17  ;;  %3030 = vmatmul.mubr.msk.f32.vlgmr.msra.gmra.mrb[20].mxu0 %vm427_vm0, %v2524_v14  ;;  %3339 = vmatprep.subr.bf16.mxu0 %v3595_v11  ;;  %v1430_v14 = vpop.permute.xlu1 %1429  ;;  %v1425_v17 = vpop.permute.xlu0 %1424 }
 0x40c   : > { %3032 = vmatprep.mubr.msk.f32.mxu0 %vm427_vm0, %v2525_v16  ;;  %v821_v29 = vrot.slane %v820_v23, 1 }
 0x40d   : > { %v1330_v20 = vsel %vm4088_vm5, 0.0, %v1326_v18 }
 0x40e   : > { %v1331_v22 = vrot.slane %v1330_v20, 4  ;;  %v822_v34 = vadd.f32 %v821_v29, %v820_v23 }
 0x40f   : > { %3033 = vmatmul.mubr.msk.f32.gmra.mrb[22].mxu0 %vm427_vm0, %v2526_v19 }
 0x410   : > { %v1332_v24 = vadd.f32 %v1331_v22, %v1330_v20  ;;  %3035 = vmatprep.mubr.msk.f32.mxu0 %vm427_vm0, %v2527_v21 }
 0x412   : > { %v1333_v27 = vrot.slane %v1332_v24, 2 }
 0x413   : > { %3036 = vmatmul.mubr.msk.f32.gmra.mrb[24].mxu0 %vm427_vm0, %v2528_v25 }
 0x414   : > { %v1334_v30 = vadd.f32 %v1333_v27, %v1332_v24  ;;  %3038 = vmatprep.mubr.msk.f32.mxu0 %vm427_vm0, %v2529_v26  ;;  %v1440_v27 = vpop.permute.xlu1 %1439 }
 0x416   : > { %v1335_v33 = vrot.slane %v1334_v30, 1 }
 0x417   : > { %3039 = vmatmul.mubr.msk.f32.gmra.mrb[26].mxu0 %vm427_vm0, %v2530_v31 }
 0x418   : > { %v1336_v35 = vadd.f32 %v1335_v33, %v1334_v30  ;;  %3041 = vmatprep.mubr.msk.f32.mxu0 %vm427_vm0, %v2531_v32  ;;  %v1435_v30 = vpop.permute.xlu0 %1434 }
 0x41a   : > { %v4140_v38 = vadd.f32 %v1336_v35, %v822_v34 }
 0x41b   : > { %3042 = vmatmul.mubr.msk.f32.gmra.mrb[28].mxu0 %vm427_vm0, %v2532_v36 }
 0x41c   : > { %3044 = vmatprep.mubr.msk.f32.mxu0 %vm427_vm0, %v2533_v37 }
 0x41f   : > { %3045 = vmatmul.mubr.msk.f32.gmra.mrb[30].mxu0 %vm427_vm0, %v2534_v39 }
 0x420   : > { %3047 = vmatprep.mubr.msk.f32.mxu0 %vm427_vm0, %v2535_v40  ;;  %v1450_v40 = vpop.permute.xlu1 %1449 }
 0x423   : > { %3048 = vmatmul.mubr.msk.f32.gmra.mrb[32].mxu0 %vm427_vm0, %v2536_v41 }
 0x424   : > { %3050 = vmatprep.mubr.msk.f32.mxu0 %vm427_vm0, %v2537_v42 }
 0x427   : > { %3051 = vmatmul.mubr.msk.f32.gmra.mrb[34].mxu0 %vm427_vm0, %v2538_v43  ;;  %v1445_v43 = vpop.permute.xlu0 %1444 }
 0x428   : > { %3120 = vmatprep.mubr.msk.f32.mxu0 %vm3596_vm1, %v3597_v28 }
 0x4de   : > { %v3031_v51 = vpop.f32.mrb[20].mxu0 }
 0x4df   : > { %v1572_v52 = vadd.f32 %v3031_v51, %v1380_v44  ;;  %v1566_v53 = vpop.f32.mrb[21].mxu0 }
 0x4e0   : > { %v1567_v55 = vadd.f32 %v1566_v53, %v1375_v45 }
 0x4e1   : > { %3506 = vtanh.f32 %v1572_v52 }
 0x4e2   : > { %3508 = vtanh.f32 %v1567_v55  ;;  %v3034_v57 = vpop.f32.mrb[22].mxu0 }
 0x4e3   : > { %v1582_v59 = vadd.f32 %v3034_v57, %v1390_v46  ;;  %v1576_v61 = vpop.f32.mrb[23].mxu0 }
 0x4e4   : > { %v1577_v62 = vadd.f32 %v1576_v61, %v1385_v47  ;;  %v2571_v61 = vld [vmem:[%s4311_s3 + $0x10] sm:$0xff] }
 0x4e5   : > { %3510 = vtanh.f32 %v1582_v59 }
 0x4e6   : > { %3512 = vtanh.f32 %v1577_v62  ;;  %v3037_v6 = vpop.f32.mrb[24].mxu0  ;;  %v2573_v62 = vld [vmem:[%s4313_s5 + $0x10] sm:$0xff] }
 0x4e7   : > { %v1592_v63 = vadd.f32 %v3037_v6, %v1400_v48  ;;  %v1586_v0 = vpop.f32.mrb[25].mxu0  ;;  %v2576_v6 = vld [vmem:[%s4309_s1 + $0x180] sm:$0xff] }
 0x4e8   : > { %v1587_v2 = vadd.f32 %v1586_v0, %v1395_v50 }
 0x4e9   : > { %3514 = vtanh.f32 %v1592_v63  ;;  %v1747_v63 = vpop.permute.xlu0 %1746 }
 0x4ea   : > { %3516 = vtanh.f32 %v1587_v2  ;;  %v3040_v4 = vpop.f32.mrb[26].mxu0 }
 0x4eb   : > { %v3507_v5 = vpop.eup %3506  ;;  %v1602_v7 = vadd.f32 %v3040_v4, %v1410_v56  ;;  %v1596_v8 = vpop.f32.mrb[27].mxu0 }
 0x4ec   : > { %v3509_v9 = vpop.eup %3508  ;;  %v1597_v10 = vadd.f32 %v1596_v8, %v1405_v58 }
 0x4ed   : > { %3518 = vtanh.f32 %v1602_v7  ;;  %v3316_v12 = vpack.c.bf16 %v3507_v5, %v3509_v9 }
 0x4ee   : > { %3520 = vtanh.f32 %v1597_v10  ;;  %v3043_v15 = vpop.f32.mrb[28].mxu0 }
 0x4ef   : > { %v3511_v16 = vpop.eup %3510  ;;  %v1612_v18 = vadd.f32 %v3043_v15, %v1420_v1  ;;  %v1606_v60 = vpop.f32.mrb[29].mxu0  ;;  %3317 = vmatpush3.bf16.msra.mxu1 %v3316_v12  ;;  %3341 = vmatpush3.bf16.msra.mxu0 %v3316_v12 }
 0x4f0   : > { %v3513_v19 = vpop.eup %3512  ;;  %v1607_v20 = vadd.f32 %v1606_v60, %v1415_v3  ;;  %3318 = vmatprep.subr.bf16.mxu1 %v3595_v11  ;;  %3342 = vmatprep.subr.bf16.mxu0 %v3595_v11  ;;  %v1668_v60 = vpop.permute.xlu1 %1667 }
 0x4f1   : > { %3522 = vtanh.f32 %v1612_v18  ;;  %v3319_v21 = vpack.c.bf16 %v3511_v16, %v3513_v19 }
 0x4f2   : > { %3524 = vtanh.f32 %v1607_v20  ;;  %v3046_v22 = vpop.f32.mrb[30].mxu0 }
 0x4f3   : > { %v3515_v23 = vpop.eup %3514  ;;  %v1622_v24 = vadd.f32 %v3046_v22, %v1430_v14  ;;  %v1616_v25 = vpop.f32.mrb[31].mxu0  ;;  %3320 = vmatpush3.bf16.msra.mxu1 %v3319_v21  ;;  %3344 = vmatpush3.bf16.msra.mxu0 %v3319_v21 }
 0x4f4   : > { %v3517_v26 = vpop.eup %3516  ;;  %v1617_v29 = vadd.f32 %v1616_v25, %v1425_v17  ;;  %3321 = vmatprep.subr.bf16.mxu1 %v3595_v11  ;;  %3345 = vmatprep.subr.bf16.mxu0 %v3595_v11 }
 0x4f5   : > { %3526 = vtanh.f32 %v1622_v24  ;;  %v3322_v31 = vpack.c.bf16 %v3515_v23, %v3517_v26 }
 0x4f6   : > { %3528 = vtanh.f32 %v1617_v29  ;;  %v3049_v32 = vpop.f32.mrb[32].mxu0  ;;  %v2577_v29 = vld [vmem:[%s4309_s1 + $0x188] sm:$0xff] }
 0x4f7   : > { %v3519_v33 = vpop.eup %3518  ;;  %v1632_v34 = vadd.f32 %v3049_v32, %v1440_v27  ;;  %v1626_v35 = vpop.f32.mrb[33].mxu0  ;;  %3323 = vmatpush3.bf16.msra.mxu1 %v3322_v31  ;;  %3347 = vmatpush3.bf16.msra.mxu0 %v3322_v31  ;;  %v2578_v31 = vld [vmem:[%s4309_s1 + $0x190] sm:$0xff] }
 0x4f8   : > { %v3521_v36 = vpop.eup %3520  ;;  %v1627_v37 = vadd.f32 %v1626_v35, %v1435_v30  ;;  %3324 = vmatprep.subr.bf16.mxu1 %v3595_v11  ;;  %3348 = vmatprep.subr.bf16.mxu0 %v3595_v11  ;;  %v2580_v35 = vld [vmem:[%s4309_s1 + $0x1a0] sm:$0xff] }
 0x4f9   : > { %3530 = vtanh.f32 %v1632_v34  ;;  %v3325_v39 = vpack.c.bf16 %v3519_v33, %v3521_v36 }
 0x4fa   : > { %3532 = vtanh.f32 %v1627_v37  ;;  %v3052_v41 = vpop.f32.mrb[34].mxu0 }
 0x4fb   : > { %v3523_v42 = vpop.eup %3522  ;;  %v1642_v44 = vadd.f32 %v3052_v41, %v1450_v40  ;;  %v1636_v45 = vpop.f32.mrb[35].mxu0  ;;  %3326 = vmatpush3.bf16.msra.mxu1 %v3325_v39  ;;  %3350 = vmatpush3.bf16.msra.mxu0 %v3325_v39  ;;  %v2581_v39 = vld [vmem:[%s4309_s1 + $0x1a8] sm:$0xff]  ;;  %v2582_v40 = vld [vmem:[%s4309_s1 + $0x1b0] sm:$0xff] }
 0x4fc   : > { %v3525_v46 = vpop.eup %3524  ;;  %v1637_v47 = vadd.f32 %v1636_v45, %v1445_v43  ;;  %3327 = vmatprep.subr.bf16.mxu1 %v3595_v11  ;;  %3351 = vmatprep.subr.bf16.mxu0 %v3595_v11  ;;  %v2584_v43 = vld [vmem:[%s4309_s1 + $0x1c0] sm:$0xff] }
 0x4fd   : > { %3534 = vtanh.f32 %v1642_v44  ;;  %v3328_v48 = vpack.c.bf16 %v3523_v42, %v3525_v46  ;;  %v2583_v42 = vld [vmem:[%s4309_s1 + $0x1b8] sm:$0xff]  ;;  %v2585_v46 = vld [vmem:[%s4309_s1 + $0x1c8] sm:$0xff] }
 0x4fe   : > { %3536 = vtanh.f32 %v1637_v47  ;;  %v2586_v47 = vld [vmem:[%s4309_s1 + $0x1d0] sm:$0xff] }
 0x4ff   : > { %v3527_v50 = vpop.eup %3526  ;;  %3329 = vmatpush3.bf16.msra.mxu1 %v3328_v48  ;;  %3353 = vmatpush3.bf16.msra.mxu0 %v3328_v48 }
 0x500   : > { %v3529_v51 = vpop.eup %3528  ;;  %3330 = vmatprep.subr.bf16.mxu1 %v3595_v11  ;;  %3354 = vmatprep.subr.bf16.mxu0 %v3595_v11 }
 0x501   : > { %v3331_v52 = vpack.c.bf16 %v3527_v50, %v3529_v51  ;;  %v2587_v50 = vld [vmem:[%s4309_s1 + $0x1d8] sm:$0xff]  ;;  %v2588_v51 = vld [vmem:[%s4309_s1 + $0x1e0] sm:$0xff] }
 0x503   : > { %v3531_v53 = vpop.eup %3530  ;;  %3332 = vmatpush3.bf16.msra.mxu1 %v3331_v52  ;;  %3356 = vmatpush3.bf16.msra.mxu0 %v3331_v52  ;;  %v2590_v52 = vld [vmem:[%s4309_s1 + $0x1f0] sm:$0xff] }
 0x504   : > { %v3533_v55 = vpop.eup %3532  ;;  %3333 = vmatprep.subr.bf16.mxu1 %v3595_v11  ;;  %3357 = vmatprep.subr.bf16.mxu0 %v3595_v11 }
 0x505   : > { %v3334_v56 = vpack.c.bf16 %v3531_v53, %v3533_v55  ;;  %v2591_v53 = vld [vmem:[%s4309_s1 + $0x1f8] sm:$0xff]  ;;  %v1894_v55 = vpop.permute.xlu1 %1893 }
 0x507   : > { %v3535_v57 = vpop.eup %3534  ;;  %3335 = vmatpush3.bf16.msra.mxu1 %v3334_v56  ;;  %3359 = vmatpush3.bf16.msra.mxu0 %v3334_v56  ;;  %v1889_v56 = vpop.permute.xlu0 %1888 }
 0x508   : > { %v3537_v58 = vpop.eup %3536  ;;  %3336 = vmatprep.subr.bf16.mxu1 %v3595_v11  ;;  %3360 = vmatprep.subr.bf16.mxu0 %v3595_v11 }
 0x509   : > { %v3337_v59 = vpack.c.bf16 %v3535_v57, %v3537_v58  ;;  %v1904_v57 = vpop.permute.xlu1 %1903 }
 0x50b   : > { %3338 = vmatpush3.bf16.msra.mxu1 %v3337_v59  ;;  %3362 = vmatpush3.bf16.msra.mxu0 %v3337_v59  ;;  %v1899_v58 = vpop.permute.xlu0 %1898 }
 0x50c   : > { %3363 = vmatprep.subr.bf16.mxu0 %v3595_v11 }
 0x50d   : > { %v1914_v59 = vpop.permute.xlu1 %1913 }
 0x50e   : > { %3086 = vmatmul.mubr.f32.vlgmr.msra.gmra.mrb[20].mxu1 %v2571_v61  ;;  %3121 = vmatmul.mubr.f32.vlgmr.msra.gmra.mrb[36].mxu0 %v2573_v62 }
 0x50f   : > { %3181 = vmatprep.mubr.msk.f32.mxu0 %vm3596_vm1, %v3597_v28  ;;  %3125 = vmatprep.mubr.msk.f32.mxu1 %vm427_vm0, %v2576_v6  ;;  %v1909_v61 = vpop.permute.xlu0 %1908 }
 0x5e1   : > { %v1736_v0 = vpop.f32.mrb[20].mxu1  ;;  %v1815_v1 = vpop.f32.mrb[36].mxu0 }
 0x5e2   : > { %v1816_v2 = vadd.f32 %v1815_v1, %v1747_v63  ;;  %v3122_v3 = vpop.f32.mrb[37].mxu0  ;;  %v3087_v4 = vpop.f32.mrb[21].mxu1  ;;  %v1737_v19 = vadd.f32 %v1736_v0, %v1668_v60 }
 0x5e3   : > { %v1924_v1 = vpop.permute.xlu1 %1923  ;;  %v1919_v3 = vpop.permute.xlu0 %1918 }
 0x5e4   : > { %v1819_v5 = vadd.f32 5.0, %v1816_v2 }
 0x5e6   : > { %v2575_v7 = vmul.f32 -1.442695, %v1819_v5  ;;  %v1827_v8 = vand.u32 2147483647, %v1819_v5  ;;  %v1826_v30 = vmin.f32 %v1819_v5, 0.0 }
 0x5e8   : > { %3538 = vpow2.f32 %v2575_v7  ;;  %v1828_v9 = vsub.f32 0.0, %v1827_v8 }
 0x5ea   : > { %v1829_v10 = vmul.f32 1.442695, %v1828_v9 }
 0x5ec   : > { %3540 = vpow2.f32 %v1829_v10  ;;  %v1934_v10 = vpop.permute.xlu1 %1933 }
 0x5f2   : > { %v3539_v12 = vpop.eup %3538 }
 0x5f3   : > { %v1823_v14 = vadd.f32 1.0, %v3539_v12 }
 0x5f5   : > { %3542 = vrcp.f32 %v1823_v14  ;;  %v1929_v14 = vpop.permute.xlu0 %1928 }
 0x5f6   : > { %v3541_v15 = vpop.eup %3540 }
 0x5f7   : > { %v1831_v16 = vadd.f32 1.0, %v3541_v15  ;;  %v1834_v17 = vmul.f32 -0.5, %v3541_v15  ;;  %v1837_v22 = vand.u32 2147483647, %v3541_v15 }
 0x5f9   : > { %3544 = vlog2.f32 %v1831_v16  ;;  %v1835_v20 = vadd.f32 1.0, %v1834_v17  ;;  %vm1838_vm7 = vcmp.lt.f32.partialorder %v1837_v22, 0.0004427343 }
 0x5fb   : > { %v1836_v26 = vmul.f32 %v3541_v15, %v1835_v20 }
 0x5ff   : > { %v3543_v18 = vpop.eup %3542 }
 0x600   : > { %v1841_v21 = vmul.f32 %v3543_v18, %v4095_v13 }
 0x602   : > { %v1842_v23 = vadd.f32 %v1841_v21, %v1737_v19  ;;  %v1944_v21 = vpop.permute.xlu1 %1943 }
 0x603   : > { %v3545_v24 = vpop.eup %3544 }
 0x604   : > { %v1833_v25 = vmul.f32 0.6931472, %v3545_v24  ;;  %v4197_v27 = vsel %vm313_vm2, %v4095_v13, %v1842_v23  ;;  %v2579_v13 = vld [vmem:[%s4309_s1 + $0x198] sm:$0xff]  ;;  %v1939_v24 = vpop.permute.xlu0 %1938 }
 0x605   : > { %3123 = vmatprep.subr.mxu1 %v4197_v27 }
 0x606   : > { %v1839_v32 = vsel %vm1838_vm7, %v1836_v26, %v1833_v25  ;;  %3124 = vmatpush3.msra.mxu1 %v4197_v27 }
 0x607   : > { %v1840_v33 = vsub.f32 %v1826_v30, %v1839_v32  ;;  %3126 = vmatmul.mubr.msk.f32.vlgmr.msra.gmra.mrb[22].mxu1 %vm427_vm0, %v2577_v29  ;;  %3387 = vmatprep.subr.bf16.mxu1 %v3595_v11 }
 0x608   : > { %3128 = vmatprep.mubr.msk.f32.mxu1 %vm427_vm0, %v2578_v31 }
 0x609   : > { %v1844_v34 = vsel %vm313_vm2, 0.0, %v1840_v33 }
 0x60a   : > { %v1845_v36 = vrot.slane %v1844_v34, 4 }
 0x60b   : > { %3129 = vmatmul.mubr.msk.f32.gmra.mrb[24].mxu1 %vm427_vm0, %v2579_v13 }
 0x60c   : > { %v1846_v37 = vadd.f32 %v1845_v36, %v1844_v34  ;;  %3131 = vmatprep.mubr.msk.f32.mxu1 %vm427_vm0, %v2580_v35  ;;  %v1954_v36 = vpop.permute.xlu1 %1953 }
 0x60e   : > { %v1847_v54 = vrot.slane %v1846_v37, 2 }
 0x60f   : > { %3132 = vmatmul.mubr.msk.f32.gmra.mrb[26].mxu1 %vm427_vm0, %v2581_v39  ;;  %v1949_v39 = vpop.permute.xlu0 %1948 }
 0x610   : > { %v1848_v41 = vadd.f32 %v1847_v54, %v1846_v37  ;;  %3134 = vmatprep.mubr.msk.f32.mxu1 %vm427_vm0, %v2582_v40 }
 0x612   : > { %v1849_v44 = vrot.slane %v1848_v41, 1 }
 0x613   : > { %3135 = vmatmul.mubr.msk.f32.gmra.mrb[28].mxu1 %vm427_vm0, %v2583_v42 }
 0x614   : > { %v1850_v45 = vadd.f32 %v1849_v44, %v1848_v41  ;;  %3137 = vmatprep.mubr.msk.f32.mxu1 %vm427_vm0, %v2584_v43 }
 0x616   : > { %v4243_v48 = vadd.f32 %v1850_v45, %v4140_v38  ;;  %v2589_v38 = vld [vmem:[%s4309_s1 + $0x1e8] sm:$0xff] }
 0x617   : > { %3138 = vmatmul.mubr.msk.f32.gmra.mrb[30].mxu1 %vm427_vm0, %v2585_v46 }
 0x618   : > { %3140 = vmatprep.mubr.msk.f32.mxu1 %vm427_vm0, %v2586_v47  ;;  %v1964_v47 = vpop.permute.xlu1 %1963 }
 0x61b   : > { %3141 = vmatmul.mubr.msk.f32.gmra.mrb[32].mxu1 %vm427_vm0, %v2587_v50 }
 0x61c   : > { %3143 = vmatprep.mubr.msk.f32.mxu1 %vm427_vm0, %v2588_v51 }
 0x61f   : > { %3144 = vmatmul.mubr.msk.f32.gmra.mrb[34].mxu1 %vm427_vm0, %v2589_v38  ;;  %v1959_v38 = vpop.permute.xlu0 %1958 }
 0x620   : > { %3146 = vmatprep.mubr.msk.f32.mxu1 %vm427_vm0, %v2590_v52 }
 0x623   : > { %3147 = vmatmul.mubr.msk.f32.gmra.mrb[36].mxu1 %vm427_vm0, %v2591_v53 }
 0x624   : > { %3216 = vmatprep.mubr.msk.f32.mxu1 %vm3596_vm1, %v3597_v28 }
 0x6da   : > { %v3127_v62 = vpop.f32.mrb[22].mxu1 }
 0x6db   : > { %v2086_v6 = vadd.f32 %v3127_v62, %v1894_v55  ;;  %v2080_v63 = vpop.f32.mrb[23].mxu1 }
 0x6dc   : > { %v2081_v0 = vadd.f32 %v2080_v63, %v1889_v56 }
 0x6dd   : > { %3546 = vtanh.f32 %v2086_v6 }
 0x6de   : > { %3548 = vtanh.f32 %v2081_v0  ;;  %v3130_v2 = vpop.f32.mrb[24].mxu1 }
 0x6df   : > { %v2096_v4 = vadd.f32 %v3130_v2, %v1904_v57  ;;  %v2090_v5 = vpop.f32.mrb[25].mxu1 }
 0x6e0   : > { %v2091_v7 = vadd.f32 %v2090_v5, %v1899_v58  ;;  %v2261_v5 = vpop.permute.xlu0 %2260 }
 0x6e1   : > { %3550 = vtanh.f32 %v2096_v4  ;;  %v2626_v4 = vld [vmem:[%s4313_s5 + $0x18] sm:$0xff] }
 0x6e2   : > { %3552 = vtanh.f32 %v2091_v7  ;;  %v3133_v28 = vpop.f32.mrb[26].mxu1 }
 0x6e3   : > { %v2106_v8 = vadd.f32 %v3133_v28, %v1914_v59  ;;  %v2100_v9 = vpop.f32.mrb[27].mxu1 }
 0x6e4   : > { %v2101_v12 = vadd.f32 %v2100_v9, %v1909_v61 }
 0x6e5   : > { %3554 = vtanh.f32 %v2106_v8 }
 0x6e6   : > { %3556 = vtanh.f32 %v2101_v12  ;;  %v3136_v15 = vpop.f32.mrb[28].mxu1 }
 0x6e7   : > { %v3547_v16 = vpop.eup %3546  ;;  %v2116_v17 = vadd.f32 %v3136_v15, %v1924_v1  ;;  %v2110_v18 = vpop.f32.mrb[29].mxu1 }
 0x6e8   : > { %v3549_v60 = vpop.eup %3548  ;;  %v2111_v19 = vadd.f32 %v2110_v18, %v1919_v3  ;;  %v2624_v3 = vld [vmem:[%s4311_s3 + $0x18] sm:$0xff] }
 0x6e9   : > { %3558 = vtanh.f32 %v2116_v17  ;;  %v3364_v20 = vpack.c.bf16 %v3547_v16, %v3549_v60 }
 0x6ea   : > { %3560 = vtanh.f32 %v2111_v19  ;;  %v3139_v22 = vpop.f32.mrb[30].mxu1 }
 0x6eb   : > { %v3551_v23 = vpop.eup %3550  ;;  %v2126_v25 = vadd.f32 %v3139_v22, %v1934_v10  ;;  %v2120_v26 = vpop.f32.mrb[31].mxu1  ;;  %3365 = vmatpush3.bf16.msra.mxu0 %v3364_v20  ;;  %3389 = vmatpush3.bf16.msra.mxu1 %v3364_v20 }
 0x6ec   : > { %v3553_v29 = vpop.eup %3552  ;;  %v2121_v30 = vadd.f32 %v2120_v26, %v1929_v14  ;;  %3366 = vmatprep.subr.bf16.mxu0 %v3595_v11  ;;  %3390 = vmatprep.subr.bf16.mxu1 %v3595_v11  ;;  %v2182_v22 = vpop.permute.xlu1 %2181 }
 0x6ed   : > { %3562 = vtanh.f32 %v2126_v25  ;;  %v3367_v31 = vpack.c.bf16 %v3551_v23, %v3553_v29 }
 0x6ee   : > { %3564 = vtanh.f32 %v2121_v30  ;;  %v3142_v32 = vpop.f32.mrb[32].mxu1 }
 0x6ef   : > { %v3555_v33 = vpop.eup %3554  ;;  %v2136_v13 = vadd.f32 %v3142_v32, %v1944_v21  ;;  %v2130_v34 = vpop.f32.mrb[33].mxu1  ;;  %3368 = vmatpush3.bf16.msra.mxu0 %v3367_v31  ;;  %3392 = vmatpush3.bf16.msra.mxu1 %v3367_v31 }
 0x6f0   : > { %v3557_v35 = vpop.eup %3556  ;;  %v2131_v37 = vadd.f32 %v2130_v34, %v1939_v24  ;;  %3369 = vmatprep.subr.bf16.mxu0 %v3595_v11  ;;  %3393 = vmatprep.subr.bf16.mxu1 %v3595_v11 }
 0x6f1   : > { %3566 = vtanh.f32 %v2136_v13  ;;  %v3370_v40 = vpack.c.bf16 %v3555_v33, %v3557_v35 }
 0x6f2   : > { %3568 = vtanh.f32 %v2131_v37  ;;  %v3145_v54 = vpop.f32.mrb[34].mxu1 }
 0x6f3   : > { %v3559_v41 = vpop.eup %3558  ;;  %v2146_v42 = vadd.f32 %v3145_v54, %v1954_v36  ;;  %v2140_v43 = vpop.f32.mrb[35].mxu1  ;;  %3371 = vmatpush3.bf16.msra.mxu0 %v3370_v40  ;;  %3395 = vmatpush3.bf16.msra.mxu1 %v3370_v40 }
 0x6f4   : > { %v3561_v44 = vpop.eup %3560  ;;  %v2141_v45 = vadd.f32 %v2140_v43, %v1949_v39  ;;  %3372 = vmatprep.subr.bf16.mxu0 %v3595_v11  ;;  %3396 = vmatprep.subr.bf16.mxu1 %v3595_v11 }
 0x6f5   : > { %3570 = vtanh.f32 %v2146_v42  ;;  %v3373_v46 = vpack.c.bf16 %v3559_v41, %v3561_v44 }
 0x6f6   : > { %3572 = vtanh.f32 %v2141_v45  ;;  %v3148_v50 = vpop.f32.mrb[36].mxu1 }
 0x6f7   : > { %v3563_v51 = vpop.eup %3562  ;;  %v2156_v52 = vadd.f32 %v3148_v50, %v1964_v47  ;;  %v2150_v53 = vpop.f32.mrb[37].mxu1  ;;  %3374 = vmatpush3.bf16.msra.mxu0 %v3373_v46  ;;  %3398 = vmatpush3.bf16.msra.mxu1 %v3373_v46 }
 0x6f8   : > { %v3565_v55 = vpop.eup %3564  ;;  %v2151_v56 = vadd.f32 %v2150_v53, %v1959_v38  ;;  %3375 = vmatprep.subr.bf16.mxu0 %v3595_v11  ;;  %3399 = vmatprep.subr.bf16.mxu1 %v3595_v11 }
 0x6f9   : > { %3574 = vtanh.f32 %v2156_v52  ;;  %v3376_v57 = vpack.c.bf16 %v3563_v51, %v3565_v55 }
 0x6fa   : > { %3576 = vtanh.f32 %v2151_v56 }
 0x6fb   : > { %v3567_v58 = vpop.eup %3566  ;;  %3377 = vmatpush3.bf16.msra.mxu0 %v3376_v57  ;;  %3401 = vmatpush3.bf16.msra.mxu1 %v3376_v57 }
 0x6fc   : > { %v3569_v59 = vpop.eup %3568  ;;  %3378 = vmatprep.subr.bf16.mxu0 %v3595_v11  ;;  %3402 = vmatprep.subr.bf16.mxu1 %v3595_v11 }
 0x6fd   : > { %v3379_v61 = vpack.c.bf16 %v3567_v58, %v3569_v59 }
 0x6ff   : > { %v3571_v62 = vpop.eup %3570  ;;  %3380 = vmatpush3.bf16.msra.mxu0 %v3379_v61  ;;  %3404 = vmatpush3.bf16.msra.mxu1 %v3379_v61 }
 0x700   : > { %v3573_v6 = vpop.eup %3572  ;;  %3381 = vmatprep.subr.bf16.mxu0 %v3595_v11  ;;  %3405 = vmatprep.subr.bf16.mxu1 %v3595_v11 }
 0x701   : > { %v3382_v63 = vpack.c.bf16 %v3571_v62, %v3573_v6 }
 0x703   : > { %v3575_v0 = vpop.eup %3574  ;;  %3383 = vmatpush3.bf16.msra.mxu0 %v3382_v63  ;;  %3407 = vmatpush3.bf16.msra.mxu1 %v3382_v63 }
 0x704   : > { %v3577_v1 = vpop.eup %3576  ;;  %3384 = vmatprep.subr.bf16.mxu0 %v3595_v11  ;;  %3408 = vmatprep.subr.bf16.mxu1 %v3595_v11 }
 0x705   : > { %v3385_v2 = vpack.c.bf16 %v3575_v0, %v3577_v1 }
 0x707   : > { %3386 = vmatpush3.bf16.msra.mxu0 %v3385_v2  ;;  %3410 = vmatpush3.bf16.msra.mxu1 %v3385_v2 }
 0x70a   : > { %3182 = vmatmul.mubr.f32.vlgmr.msra.gmra.mrb[38].mxu0 %v2624_v3  ;;  %3217 = vmatmul.mubr.f32.vlgmr.msra.gmra.mrb[38].mxu1 %v2626_v4 }
 0x7dd   : > { %v2250_v7 = vpop.f32.mrb[38].mxu0  ;;  %v2329_v28 = vpop.f32.mrb[38].mxu1 }
 0x7de   : > { %v2330_v8 = vadd.f32 %v2329_v28, %v2261_v5  ;;  %v3218_v9 = vpop.f32.mrb[39].mxu1  ;;  %v3183_v10 = vpop.f32.mrb[39].mxu0  ;;  %v2251_v23 = vadd.f32 %v2250_v7, %v2182_v22 }
 0x7e0   : > { %v2333_v11 = vadd.f32 5.0, %v2330_v8 }
 0x7e2   : > { %v2628_v12 = vmul.f32 -1.442695, %v2333_v11  ;;  %v2341_v14 = vand.u32 2147483647, %v2333_v11  ;;  %v2340_v13 = vmin.f32 %v2333_v11, 0.0 }
 0x7e4   : > { %3578 = vpow2.f32 %v2628_v12  ;;  %v2342_v15 = vsub.f32 0.0, %v2341_v14 }
 0x7e6   : > { %v2343_v16 = vmul.f32 1.442695, %v2342_v15 }
 0x7e8   : > { %3580 = vpow2.f32 %v2343_v16 }
 0x7ee   : > { %v3579_v17 = vpop.eup %3578 }
 0x7ef   : > { %v2337_v18 = vadd.f32 1.0, %v3579_v17 }
 0x7f1   : > { %3582 = vrcp.f32 %v2337_v18 }
 0x7f2   : > { %v3581_v60 = vpop.eup %3580 }
 0x7f3   : > { %v2345_v19 = vadd.f32 1.0, %v3581_v60  ;;  %v2348_v20 = vmul.f32 -0.5, %v3581_v60  ;;  %v2351_v26 = vand.u32 2147483647, %v3581_v60 }
 0x7f5   : > { %3584 = vlog2.f32 %v2345_v19  ;;  %v2349_v24 = vadd.f32 1.0, %v2348_v20  ;;  %vm2352_vm8 = vcmp.lt.f32.partialorder %v2351_v26, 0.0004427343 }
 0x7f7   : > { %v2350_v32 = vmul.f32 %v3581_v60, %v2349_v24 }
 0x7fb   : > { %v3583_v21 = vpop.eup %3582 }
 0x7fc   : > { %v2355_v25 = vmul.f32 %v3583_v21, %v4197_v27 }
 0x7fe   : > { %v2356_v29 = vadd.f32 %v2355_v25, %v2251_v23 }
 0x7ff   : > { %v3585_v30 = vpop.eup %3584 }
 0x800   : > { %v2347_v31 = vmul.f32 0.6931472, %v3585_v30  ;;  %v2357_v33 = vsel %vm4088_vm5, %v4197_v27, %v2356_v29 }
 0x801   : > { %2366 = vst [vmem:[%s306_s15] sm:$0xff] %v2357_v33 }
 0x802   : > { %v2353_v34 = vsel %vm2352_vm8, %v2350_v32, %v2347_v31 }
 0x803   : > { %v2354_v35 = vsub.f32 %v2340_v13, %v2353_v34 }
 0x805   : > { %v2358_v36 = vsel %vm4088_vm5, 0.0, %v2354_v35 }
 0x806   : > { %v2359_v37 = vrot.slane %v2358_v36, 4 }
 0x808   : > { %v2360_v39 = vadd.f32 %v2359_v37, %v2358_v36 }
 0x80a   : > { %v2361_v40 = vrot.slane %v2360_v39, 2 }
 0x80c   : > { %v2362_v54 = vadd.f32 %v2361_v40, %v2360_v39 }
 0x80e   : > { %v2363_v41 = vrot.slane %v2362_v54, 1 }
 0x810   : > { %v2364_v42 = vadd.f32 %v2363_v41, %v2362_v54 }
 0x812   : > { %v2365_v27 = vadd.f32 %v2364_v42, %v4243_v48 }
 0x814   : > { %2367 = vst [vmem:[%s309_s18] sm:$0x1] %v2365_v27 }
 0x815 PF: > { %s19_s27 = sadd.s32 1, %s3592_s27  }
 0x816   : > { %p16_p4 = scmp.ge.s32.totalorder %s19_s27, 4  }
 0x818   :  { %18 = sbr.rel (!%p16_p4) target bundleno = 1 (0x1), region = 108 }

</bundles_post_ra>
